<compile_context>
chip_gen: v5e
topology: v5e:2x2
jax: 0.10.0
libtpu: 0.0.40
codegen_flags: <defaults>
</compile_context>

<pallas_src>
import functools

import jax
import jax.numpy as jnp
from jax.experimental import pallas as pl
from jax.experimental.pallas import tpu as pltpu


def _round_up(n, m):
    return ((n + m - 1) // m) * m


def _cdiv(a, b):
    return (a + b - 1) // b


def _vmem_ceiling_bytes():
    """~75% of physical VMEM: ~96 MiB on v5e/v6e (128 MiB), ~48 MiB on v7x (64 MiB/TC)."""
    try:
        cap = int(pltpu.get_tpu_info().vmem_capacity_bytes)
    except Exception:
        cap = 64 << 20  # conservative fallback (v7x per-TC)
    return max((cap * 3) // 4, 32 << 20)


def _tile_working_set_bytes(tile_b, in_f, hid_p, out_p):
    # double-buffered bf16 x / int32 labels / f32 logits tiles + f32 intermediate scratch
    # for the (tile_b, hid_p|out_p) dot results, + the tiny loss block.
    return (2 * (tile_b * in_f * 2 + tile_b * 4 + tile_b * out_p * 4)
            + 4 * tile_b * max(hid_p, out_p) * 4
            + 2 * 8 * 128 * 4)


def _choose_tile_b(B, in_f, hid_p, out_p, param_bytes, vmem_ceiling):
    candidates = (2048, 1024, 512, 256, 128)
    tile_b = 128
    for tb in candidates:
        if (2 * param_bytes + _tile_working_set_bytes(tb, in_f, hid_p, out_p)
                + (4 << 20)) <= vmem_ceiling:
            tile_b = tb
            break
    # don't over-pad tiny batches
    tile_b = min(tile_b, max(128, _round_up(max(B, 1), 128)))
    # keep >=2 grid tiles (v7x megacore split) as long as the 256-row MXU stays filled
    while tile_b > 256 and _cdiv(max(B, 1), tile_b) < 2:
        tile_b //= 2
    return tile_b


def _make_mlp_kernel(num_hidden_layers, num_classes, true_batch, tile_b):
    n_param_refs = 2 * (num_hidden_layers + 2)  # (W, b) per layer

    def kernel(x_ref, labels_ref, *rest):
        param_refs = rest[:n_param_refs]
        logits_ref, loss_ref = rest[n_param_refs], rest[n_param_refs + 1]

        # Fused Linear(+ReLU) chain: bf16 operands on the MXU, f32 accumulation,
        # f32 bias add / clamp(min=0); h carried bf16 between layers (halves vreg/VMEM
        # pressure for the (tile_b, hid_p) intermediate; numerically identical since
        # every dot consumes bf16 anyway).
        h = x_ref[...]                                       # (TB, in_f) bf16
        for i in range(num_hidden_layers + 1):
            w = param_refs[2 * i][...]                       # (in, out) bf16, VMEM-resident
            b = param_refs[2 * i + 1][...]                   # (1, out)  f32
            h = jnp.maximum(
                jnp.dot(h, w, preferred_element_type=jnp.float32) + b, 0.0
            ).astype(jnp.bfloat16)

        logits = (jnp.dot(h, param_refs[-2][...], preferred_element_type=jnp.float32)
                  + param_refs[-1][...])
        logits_ref[...] = logits                             # lane-dense (TB, out_p) store

        # Cross-entropy partial sum for this tile:
        #   sum_b [ logsumexp(logits_b) - logits_b[label_b] ]   (padded rows/classes masked)
        tb, cp = logits.shape
        col = jax.lax.broadcasted_iota(jnp.int32, (tb, cp), 1)
        masked = jnp.where(col < num_classes, logits, jnp.float32(-1e30))
        m = jnp.max(masked, axis=-1, keepdims=True)
        lse = m + jnp.log(jnp.sum(jnp.exp(masked - m), axis=-1, keepdims=True))
        onehot = (col == labels_ref[...]).astype(jnp.float32)   # (TB,1) labels broadcast
        picked = jnp.sum(logits * onehot, axis=-1, keepdims=True)
        row = jax.lax.broadcasted_iota(jnp.int32, (tb, 1), 0) + pl.program_id(0) * tile_b
        row_mask = (row < true_batch).astype(jnp.float32)       # drop padded batch rows
        tile_loss = jnp.sum((lse - picked) * row_mask)
        # Per-tile partial sum as a full lane-dense (8,128) block so the grid axis can be
        # "parallel" (no cross-tile accumulator state).
        loss_ref[...] = jnp.full(loss_ref.shape, tile_loss, jnp.float32)

    return kernel


@functools.partial(jax.jit, static_argnames=("num_hidden_layers", "num_classes",
                                             "tile_b", "vmem_limit"))
def _forward(x, labels, padded_params, *, num_hidden_layers, num_classes,
             tile_b, vmem_limit):
    B, in_f = x.shape
    hid_p = padded_params[0].shape[1]
    out_p = padded_params[-1].shape[-1]

    pb = _round_up(max(B, 1), tile_b)
    num_tiles = pb // tile_b

    # Single bf16 cast pass; batch pad only when B is not a tile multiple.  No feature
    # padding of x on the hot path (the kernel loads the true feature width).
    x_b = x.astype(jnp.bfloat16)
    labels_2d = labels.astype(jnp.int32).reshape(B, 1)
    if pb != B:
        x_b = jnp.zeros((pb, in_f), jnp.bfloat16).at[:B].set(x_b)
        labels_2d = jnp.zeros((pb, 1), jnp.int32).at[:B].set(labels_2d)

    kernel = _make_mlp_kernel(num_hidden_layers, num_classes, B, tile_b)

    resident = lambda i: (0, 0)                    # weights/biases stay VMEM-resident
    in_specs = ([pl.BlockSpec((tile_b, in_f), lambda i: (i, 0)),
                 pl.BlockSpec((tile_b, 1), lambda i: (i, 0))]
                + [pl.BlockSpec(p.shape, resident) for p in padded_params])
    out_specs = (pl.BlockSpec((tile_b, out_p), lambda i: (i, 0)),
                 pl.BlockSpec((1, 8, 128), lambda i: (i, 0, 0)))
    out_shape = (jax.ShapeDtypeStruct((pb, out_p), jnp.float32),
                 jax.ShapeDtypeStruct((num_tiles, 8, 128), jnp.float32))

    param_bytes = sum(int(p.size) * p.dtype.itemsize for p in padded_params)
    flops = 2 * pb * (in_f * hid_p + num_hidden_layers * hid_p * hid_p + hid_p * out_p)
    bytes_accessed = (x_b.size * 2 + labels_2d.size * 4 + param_bytes
                      + pb * out_p * 4 + num_tiles * 8 * 128 * 4)
    cost = pl.CostEstimate(flops=flops, transcendentals=pb * (out_p + 1),
                           bytes_accessed=bytes_accessed)

    logits_pad, loss_parts = pl.pallas_call(
        kernel,
        grid=(num_tiles,),
        in_specs=in_specs,
        out_specs=out_specs,
        out_shape=out_shape,
        compiler_params=pltpu.CompilerParams(
            dimension_semantics=("parallel",),
            vmem_limit_bytes=vmem_limit),
        cost_estimate=cost,
    )(x_b, labels_2d, *padded_params)

    logits = logits_pad[:B, :num_classes]
    loss = jnp.sum(loss_parts[:, 0, 0]) / B
    return logits, loss


def feedforward_classifier(x, labels, padded_params, *, num_hidden_layers,
                           num_classes, tile_b=None):
    """padded_params: (W0,b0,...,Wf,bf); W bf16, b f32 [1,out_p]; feature dims 128-padded
    except W0's input dim, which is kept at the true input_size (x needs no feature pad)."""
    B, in_f = x.shape
    hid_p = padded_params[0].shape[1]
    out_p = padded_params[-1].shape[-1]
    param_bytes = sum(int(p.size) * p.dtype.itemsize for p in padded_params)

    vmem_ceiling = _vmem_ceiling_bytes()
    if tile_b is None:
        tile_b = _choose_tile_b(B, in_f, hid_p, out_p, param_bytes, vmem_ceiling)

    work = _tile_working_set_bytes(tile_b, in_f, hid_p, out_p)
    # Pallas double-buffers every input spec, including the "resident" params -> 2x.
    if 2 * param_bytes + work + (2 << 20) > vmem_ceiling:
        # TODO(synk): weight-streaming fallback (per-layer / output-feature grid axis or
        # an inner pltpu.emit_pipeline over W tiles) for models larger than VMEM.
        raise ValueError("model too large for VMEM-resident weights on this TPU")
    vmem_limit = int(min(vmem_ceiling,
                         max(2 * param_bytes + work + (8 << 20), 32 << 20)))

    return _forward(x, labels, padded_params,
                    num_hidden_layers=num_hidden_layers, num_classes=num_classes,
                    tile_b=int(tile_b), vmem_limit=vmem_limit)


def init_params(key, input_size, output_size, hidden_size, num_hidden_layers):
    """Deterministic PyTorch-Linear-style init (uniform(-1/sqrt(fan_in), 1/sqrt(fan_in)))."""
    sizes = ([(input_size, hidden_size)]
             + [(hidden_size, hidden_size)] * num_hidden_layers
             + [(hidden_size, output_size)])
    params = []
    for fan_in, fan_out in sizes:
        key, kw, kb = jax.random.split(key, 3)
        bound = 1.0 / (fan_in ** 0.5)
        w = jax.random.uniform(kw, (fan_in, fan_out), jnp.float32, -bound, bound)
        b = jax.random.uniform(kb, (1, fan_out), jnp.float32, -bound, bound)
        params += [w, b]
    return tuple(params)


def prepare_params(params):
    """Pad feature dims to 128 (lane/MXU-dense) and cast W to bf16.  Layer 0 keeps its
    true input width so x never needs a feature-pad pass."""
    padded = []
    n_layers = len(params) // 2
    for li in range(n_layers):
        w, b = params[2 * li], params[2 * li + 1]
        fi, fo = w.shape
        ip = fi if li == 0 else _round_up(fi, 128)
        op = _round_up(fo, 128)
        wp = jnp.zeros((ip, op), jnp.bfloat16).at[:fi, :fo].set(w.astype(jnp.bfloat16))
        bp = jnp.zeros((1, op), jnp.float32).at[:, :fo].set(b.astype(jnp.float32))
        padded += [wp, bp]
    return tuple(padded)


def _reference(x, labels, params, num_hidden_layers):
    """Mirrors the kernel numerics (bf16 matmul inputs, f32 accumulation/elementwise)."""
    h = x
    for i in range(num_hidden_layers + 1):
        w = params[2 * i].astype(jnp.bfloat16)
        b = params[2 * i + 1]
        h = jnp.maximum(jnp.dot(h.astype(jnp.bfloat16), w,
                                preferred_element_type=jnp.float32) + b, 0.0)
    wf = params[-2].astype(jnp.bfloat16)
    bf = params[-1]
    logits = jnp.dot(h.astype(jnp.bfloat16), wf,
                     preferred_element_type=jnp.float32) + bf
    lse = jax.scipy.special.logsumexp(logits, axis=-1)
    picked = jnp.take_along_axis(logits, labels[:, None], axis=-1)[:, 0]
    return logits, jnp.mean(lse - picked)


if __name__ == "__main__":
    input_size, output_size, hidden_size, num_hidden_layers = 32, 8, 64, 2
    batch = 512  # adaptive tiling -> tile_b=256, 2 tiles: exercises the pipelined grid
                 # and the v7x megacore split while filling the 256-row MXU on v6e/v7x.

    key = jax.random.PRNGKey(0)
    kx, kl, kp = jax.random.split(key, 3)
    x = jax.random.normal(kx, (batch, input_size), jnp.float32)
    labels = jax.random.randint(kl, (batch,), 0, output_size, jnp.int32)
    params = init_params(kp, input_size, output_size, hidden_size, num_hidden_layers)
    padded_params = prepare_params(params)

    logits, loss = feedforward_classifier(
        x, labels, padded_params,
        num_hidden_layers=num_hidden_layers,
        num_classes=output_size)
    jax.block_until_ready((logits, loss))

    ref_logits, ref_loss = _reference(x, labels, params, num_hidden_layers)
    assert logits.shape == (batch, output_size)
    assert jnp.allclose(logits, ref_logits, atol=2e-3, rtol=2e-3), "logits mismatch"
    assert jnp.allclose(loss, ref_loss, atol=2e-3, rtol=2e-3), "loss mismatch"

    print("KERNEL_OK")
</pallas_src>

<mosaic_0001>
module attributes {stable_mosaic.version = 11 : i64} {
  func.func @kernel(%arg0: i32, %arg1: memref<256x32xbf16, #tpu.memory_space<vmem>>, %arg2: memref<256x1xi32, #tpu.memory_space<vmem>>, %arg3: memref<32x128xbf16, #tpu.memory_space<vmem>>, %arg4: memref<1x128xf32, #tpu.memory_space<vmem>>, %arg5: memref<128x128xbf16, #tpu.memory_space<vmem>>, %arg6: memref<1x128xf32, #tpu.memory_space<vmem>>, %arg7: memref<128x128xbf16, #tpu.memory_space<vmem>>, %arg8: memref<1x128xf32, #tpu.memory_space<vmem>>, %arg9: memref<128x128xbf16, #tpu.memory_space<vmem>>, %arg10: memref<1x128xf32, #tpu.memory_space<vmem>>, %arg11: memref<256x128xf32, #tpu.memory_space<vmem>>, %arg12: memref<1x8x128xf32, #tpu.memory_space<vmem>>) attributes {dimension_semantics = [#tpu.dimension_semantics<parallel>], iteration_bounds = array<i64: 2>, scalar_prefetch = 0 : i64, scratch_operands = 0 : i64, tpu.core_type = #tpu.core_type<tc>, window_params = [{transform_indices = @transform_0, window_bounds = array<i64: 256, 32>}, {transform_indices = @transform_1, window_bounds = array<i64: 256, 1>}, {pipeline_mode = #tpu.pipeline_mode<synchronous>, transform_indices = @transform_2, window_bounds = array<i64: 32, 128>}, {pipeline_mode = #tpu.pipeline_mode<synchronous>, transform_indices = @transform_3, window_bounds = array<i64: 1, 128>}, {pipeline_mode = #tpu.pipeline_mode<synchronous>, transform_indices = @transform_4, window_bounds = array<i64: 128, 128>}, {pipeline_mode = #tpu.pipeline_mode<synchronous>, transform_indices = @transform_5, window_bounds = array<i64: 1, 128>}, {pipeline_mode = #tpu.pipeline_mode<synchronous>, transform_indices = @transform_6, window_bounds = array<i64: 128, 128>}, {pipeline_mode = #tpu.pipeline_mode<synchronous>, transform_indices = @transform_7, window_bounds = array<i64: 1, 128>}, {pipeline_mode = #tpu.pipeline_mode<synchronous>, transform_indices = @transform_8, window_bounds = array<i64: 128, 128>}, {pipeline_mode = #tpu.pipeline_mode<synchronous>, transform_indices = @transform_9, window_bounds = array<i64: 1, 128>}, {transform_indices = @transform_10, window_bounds = array<i64: 256, 128>}, {transform_indices = @transform_11, window_bounds = array<i64: 1, 8, 128>}]} {
    %c0 = arith.constant 0 : index
    %c0_0 = arith.constant 0 : index
    %0 = vector.load %arg1[%c0, %c0_0] : memref<256x32xbf16, #tpu.memory_space<vmem>>, vector<256x32xbf16>
    %c0_1 = arith.constant 0 : index
    %c0_2 = arith.constant 0 : index
    %1 = vector.load %arg3[%c0_1, %c0_2] : memref<32x128xbf16, #tpu.memory_space<vmem>>, vector<32x128xbf16>
    %c0_3 = arith.constant 0 : index
    %c0_4 = arith.constant 0 : index
    %2 = vector.load %arg4[%c0_3, %c0_4] : memref<1x128xf32, #tpu.memory_space<vmem>>, vector<1x128xf32>
    %cst = arith.constant dense<0.000000e+00> : vector<256x128xf32>
    %3 = tpu.matmul %0, %1, %cst {dimension_numbers = #tpu.dot_dimension_numbers<[1], [0], [0], [1], [0, 0, 1, 1], [], []>} : vector<256x32xbf16>, vector<32x128xbf16>, vector<256x128xf32> -> vector<256x128xf32>
    %4 = vector.broadcast %2 : vector<1x128xf32> to vector<256x128xf32>
    %5 = arith.addf %3, %4 : vector<256x128xf32>
    %cst_5 = arith.constant 0.000000e+00 : f32
    %6 = vector.broadcast %cst_5 : f32 to vector<256x128xf32>
    %7 = arith.maximumf %5, %6 : vector<256x128xf32>
    %8 = arith.truncf %7 : vector<256x128xf32> to vector<256x128xbf16>
    %c0_6 = arith.constant 0 : index
    %c0_7 = arith.constant 0 : index
    %9 = vector.load %arg5[%c0_6, %c0_7] : memref<128x128xbf16, #tpu.memory_space<vmem>>, vector<128x128xbf16>
    %c0_8 = arith.constant 0 : index
    %c0_9 = arith.constant 0 : index
    %10 = vector.load %arg6[%c0_8, %c0_9] : memref<1x128xf32, #tpu.memory_space<vmem>>, vector<1x128xf32>
    %cst_10 = arith.constant dense<0.000000e+00> : vector<256x128xf32>
    %11 = tpu.matmul %8, %9, %cst_10 {dimension_numbers = #tpu.dot_dimension_numbers<[1], [0], [0], [1], [0, 0, 1, 1], [], []>} : vector<256x128xbf16>, vector<128x128xbf16>, vector<256x128xf32> -> vector<256x128xf32>
    %12 = vector.broadcast %10 : vector<1x128xf32> to vector<256x128xf32>
    %13 = arith.addf %11, %12 : vector<256x128xf32>
    %cst_11 = arith.constant 0.000000e+00 : f32
    %14 = vector.broadcast %cst_11 : f32 to vector<256x128xf32>
    %15 = arith.maximumf %13, %14 : vector<256x128xf32>
    %16 = arith.truncf %15 : vector<256x128xf32> to vector<256x128xbf16>
    %c0_12 = arith.constant 0 : index
    %c0_13 = arith.constant 0 : index
    %17 = vector.load %arg7[%c0_12, %c0_13] : memref<128x128xbf16, #tpu.memory_space<vmem>>, vector<128x128xbf16>
    %c0_14 = arith.constant 0 : index
    %c0_15 = arith.constant 0 : index
    %18 = vector.load %arg8[%c0_14, %c0_15] : memref<1x128xf32, #tpu.memory_space<vmem>>, vector<1x128xf32>
    %cst_16 = arith.constant dense<0.000000e+00> : vector<256x128xf32>
    %19 = tpu.matmul %16, %17, %cst_16 {dimension_numbers = #tpu.dot_dimension_numbers<[1], [0], [0], [1], [0, 0, 1, 1], [], []>} : vector<256x128xbf16>, vector<128x128xbf16>, vector<256x128xf32> -> vector<256x128xf32>
    %20 = vector.broadcast %18 : vector<1x128xf32> to vector<256x128xf32>
    %21 = arith.addf %19, %20 : vector<256x128xf32>
    %cst_17 = arith.constant 0.000000e+00 : f32
    %22 = vector.broadcast %cst_17 : f32 to vector<256x128xf32>
    %23 = arith.maximumf %21, %22 : vector<256x128xf32>
    %24 = arith.truncf %23 : vector<256x128xf32> to vector<256x128xbf16>
    %c0_18 = arith.constant 0 : index
    %c0_19 = arith.constant 0 : index
    %25 = vector.load %arg9[%c0_18, %c0_19] : memref<128x128xbf16, #tpu.memory_space<vmem>>, vector<128x128xbf16>
    %cst_20 = arith.constant dense<0.000000e+00> : vector<256x128xf32>
    %26 = tpu.matmul %24, %25, %cst_20 {dimension_numbers = #tpu.dot_dimension_numbers<[1], [0], [0], [1], [0, 0, 1, 1], [], []>} : vector<256x128xbf16>, vector<128x128xbf16>, vector<256x128xf32> -> vector<256x128xf32>
    %c0_21 = arith.constant 0 : index
    %c0_22 = arith.constant 0 : index
    %27 = vector.load %arg10[%c0_21, %c0_22] : memref<1x128xf32, #tpu.memory_space<vmem>>, vector<1x128xf32>
    %28 = vector.broadcast %27 : vector<1x128xf32> to vector<256x128xf32>
    %29 = arith.addf %26, %28 : vector<256x128xf32>
    %c0_23 = arith.constant 0 : index
    %c0_24 = arith.constant 0 : index
    %30 = vector.load %arg11[%c0_23, %c0_24] : memref<256x128xf32, #tpu.memory_space<vmem>>, vector<256x128xf32>
    tpu.vector_store %arg11[%c0_23, %c0_24], %29 {strides = array<i32>} : memref<256x128xf32, #tpu.memory_space<vmem>>, vector<256x128xf32>,
    %31 = tpu.iota {dimensions = array<i32: 1>} : vector<256x128xi32>
    %c8_i32 = arith.constant 8 : i32
    %32 = vector.broadcast %c8_i32 : i32 to vector<256x128xi32>
    %33 = arith.cmpi slt, %31, %32 : vector<256x128xi32>
    %cst_25 = arith.constant -1.000000e+30 : f32
    %34 = vector.broadcast %cst_25 : f32 to vector<256x128xf32>
    %35 = arith.select %33, %29, %34 : vector<256x128xi1>, vector<256x128xf32>
    %cst_26 = arith.constant dense<0xFF800000> : vector<256xf32>
    %36 = vector.multi_reduction <maximumf>, %35, %cst_26 [1] : vector<256x128xf32> to vector<256xf32>
    %37 = vector.shape_cast %36 : vector<256xf32> to vector<256x1xf32>
    %38 = vector.broadcast %37 : vector<256x1xf32> to vector<256x128xf32>
    %39 = arith.subf %35, %38 : vector<256x128xf32>
    %40 = math.exp %39 : vector<256x128xf32>
    %cst_27 = arith.constant dense<0.000000e+00> : vector<256xf32>
    %41 = vector.multi_reduction <add>, %40, %cst_27 [1] : vector<256x128xf32> to vector<256xf32>
    %42 = vector.shape_cast %41 : vector<256xf32> to vector<256x1xf32>
    %43 = math.log %42 : vector<256x1xf32>
    %44 = arith.addf %37, %43 : vector<256x1xf32>
    %c0_28 = arith.constant 0 : index
    %c0_29 = arith.constant 0 : index
    %45 = vector.load %arg2[%c0_28, %c0_29] : memref<256x1xi32, #tpu.memory_space<vmem>>, vector<256x1xi32>
    %46 = vector.broadcast %45 : vector<256x1xi32> to vector<256x128xi32>
    %47 = arith.cmpi eq, %31, %46 : vector<256x128xi32>
    %48 = arith.extui %47 : vector<256x128xi1> to vector<256x128xi32>
    %49 = arith.sitofp %48 : vector<256x128xi32> to vector<256x128xf32>
    %50 = arith.mulf %29, %49 : vector<256x128xf32>
    %cst_30 = arith.constant dense<0.000000e+00> : vector<256xf32>
    %51 = vector.multi_reduction <add>, %50, %cst_30 [1] : vector<256x128xf32> to vector<256xf32>
    %52 = vector.shape_cast %51 : vector<256xf32> to vector<256x1xf32>
    %53 = tpu.iota {dimensions = array<i32: 0>} : vector<256x1xi32>
    %c256_i32 = arith.constant 256 : i32
    %54 = arith.muli %arg0, %c256_i32 : i32
    %55 = vector.broadcast %54 : i32 to vector<256x1xi32>
    %56 = arith.addi %53, %55 : vector<256x1xi32>
    %c512_i32 = arith.constant 512 : i32
    %57 = vector.broadcast %c512_i32 : i32 to vector<256x1xi32>
    %58 = arith.cmpi slt, %56, %57 : vector<256x1xi32>
    %59 = arith.extui %58 : vector<256x1xi1> to vector<256x1xi32>
    %60 = arith.sitofp %59 : vector<256x1xi32> to vector<256x1xf32>
    %61 = arith.subf %44, %52 : vector<256x1xf32>
    %62 = arith.mulf %61, %60 : vector<256x1xf32>
    %63 = vector.shape_cast %62 : vector<256x1xf32> to vector<1x256x1xf32>
    %cst_31 = arith.constant dense<0.000000e+00> : vector<1xf32>
    %64 = vector.multi_reduction <add>, %63, %cst_31 [1, 2] : vector<1x256x1xf32> to vector<1xf32>
    %65 = vector.shape_cast %64 : vector<1xf32> to vector<1x1x1xf32>
    %66 = vector.extract %65[0, 0, 0] : f32 from vector<1x1x1xf32>
    %67 = vector.broadcast %66 : f32 to vector<1x8x128xf32>
    %c0_32 = arith.constant 0 : index
    %c0_33 = arith.constant 0 : index
    %c0_34 = arith.constant 0 : index
    %68 = vector.load %arg12[%c0_32, %c0_33, %c0_34] : memref<1x8x128xf32, #tpu.memory_space<vmem>>, vector<1x8x128xf32>
    tpu.vector_store %arg12[%c0_32, %c0_33, %c0_34], %67 {strides = array<i32>} : memref<1x8x128xf32, #tpu.memory_space<vmem>>, vector<1x8x128xf32>,
    return
  }
  func.func @transform_0(%arg0: i32) -> (i32, i32) {
    %c0_i32 = arith.constant 0 : i32
    %c0_i32_0 = arith.constant 0 : i32
    return %arg0, %c0_i32 : i32, i32
  }
  func.func @transform_1(%arg0: i32) -> (i32, i32) {
    %c0_i32 = arith.constant 0 : i32
    %c0_i32_0 = arith.constant 0 : i32
    return %arg0, %c0_i32 : i32, i32
  }
  func.func @transform_2(%arg0: i32) -> (i32, i32) {
    %c0_i32 = arith.constant 0 : i32
    %c0_i32_0 = arith.constant 0 : i32
    %c0_i32_1 = arith.constant 0 : i32
    return %c0_i32, %c0_i32_0 : i32, i32
  }
  func.func @transform_3(%arg0: i32) -> (i32, i32) {
    %c0_i32 = arith.constant 0 : i32
    %c0_i32_0 = arith.constant 0 : i32
    %c0_i32_1 = arith.constant 0 : i32
    return %c0_i32, %c0_i32_0 : i32, i32
  }
  func.func @transform_4(%arg0: i32) -> (i32, i32) {
    %c0_i32 = arith.constant 0 : i32
    %c0_i32_0 = arith.constant 0 : i32
    %c0_i32_1 = arith.constant 0 : i32
    return %c0_i32, %c0_i32_0 : i32, i32
  }
  func.func @transform_5(%arg0: i32) -> (i32, i32) {
    %c0_i32 = arith.constant 0 : i32
    %c0_i32_0 = arith.constant 0 : i32
    %c0_i32_1 = arith.constant 0 : i32
    return %c0_i32, %c0_i32_0 : i32, i32
  }
  func.func @transform_6(%arg0: i32) -> (i32, i32) {
    %c0_i32 = arith.constant 0 : i32
    %c0_i32_0 = arith.constant 0 : i32
    %c0_i32_1 = arith.constant 0 : i32
    return %c0_i32, %c0_i32_0 : i32, i32
  }
  func.func @transform_7(%arg0: i32) -> (i32, i32) {
    %c0_i32 = arith.constant 0 : i32
    %c0_i32_0 = arith.constant 0 : i32
    %c0_i32_1 = arith.constant 0 : i32
    return %c0_i32, %c0_i32_0 : i32, i32
  }
  func.func @transform_8(%arg0: i32) -> (i32, i32) {
    %c0_i32 = arith.constant 0 : i32
    %c0_i32_0 = arith.constant 0 : i32
    %c0_i32_1 = arith.constant 0 : i32
    return %c0_i32, %c0_i32_0 : i32, i32
  }
  func.func @transform_9(%arg0: i32) -> (i32, i32) {
    %c0_i32 = arith.constant 0 : i32
    %c0_i32_0 = arith.constant 0 : i32
    %c0_i32_1 = arith.constant 0 : i32
    return %c0_i32, %c0_i32_0 : i32, i32
  }
  func.func @transform_10(%arg0: i32) -> (i32, i32) {
    %c0_i32 = arith.constant 0 : i32
    %c0_i32_0 = arith.constant 0 : i32
    return %arg0, %c0_i32 : i32, i32
  }
  func.func @transform_11(%arg0: i32) -> (i32, i32, i32) {
    %c0_i32 = arith.constant 0 : i32
    %c0_i32_0 = arith.constant 0 : i32
    %c0_i32_1 = arith.constant 0 : i32
    return %arg0, %c0_i32, %c0_i32_0 : i32, i32, i32
  }
}

</mosaic_0001>

<bundles_post_ra>
// kernel: _forward.1
= control target key start
LH: loop header
LB: loop body
LE: loop exit
PB: predicated region body
PF: predicated region fallthrough
CT: control target
= control target key end

     0   :  { %s2939_s17 = smov 0   ;;  %s4002_s0 = inlined_call_operand.vmem [shape: bf16[512,32], index: 0, kind: input, shape index: {}]   ;;  %s4003_s1 = inlined_call_operand.vmem [shape: s32[512,1], index: 1, kind: input, shape index: {}]   ;;  %s4004_s2 = inlined_call_operand.vmem [shape: bf16[32,128], index: 2, kind: input, shape index: {}]   ;;  %s4005_s3 = inlined_call_operand.vmem [shape: f32[1,128], index: 3, kind: input, shape index: {}]   ;;  %s4006_s4 = inlined_call_operand.vmem [shape: bf16[128,128], index: 4, kind: input, shape index: {}]   ;;  %s4007_s5 = inlined_call_operand.vmem [shape: f32[1,128], index: 5, kind: input, shape index: {}]   ;;  %s4008_s6 = inlined_call_operand.vmem [shape: bf16[128,128], index: 6, kind: input, shape index: {}]   ;;  %s4009_s7 = inlined_call_operand.vmem [shape: f32[1,128], index: 7, kind: input, shape index: {}]   ;;  %s4010_s8 = inlined_call_operand.vmem [shape: bf16[128,128], index: 8, kind: input, shape index: {}]   ;;  %s4011_s9 = inlined_call_operand.vmem [shape: f32[1,128], index: 9, kind: input, shape index: {}]   ;;  %s4012_s10 = inlined_call_operand.vmem [shape: f32[512,128], index: 10, kind: output, shape index: {0}]   ;;  %s4013_s11 = inlined_call_operand.vmem [shape: f32[2,8,128], index: 11, kind: output, shape index: {1}]  }
   0x1 LB: > { %s2945_s18 = sadd.s32 4294967295, %s2875_s17   ;;  %p2421_p0 = scmp.ge.s32.totalorder %s2875_s17, 1  ;;  %s2875_s17 = sphi %s2939_s17, %s22_s17  }
   0x2   : > { %p352_p1 = scmp.lt.s32.totalorder %s2875_s17, 3 }
   0x4   : > { %p353_p2 = pnand %p2421_p0, %p352_p1 }
   0x6   : > { %356 = sbr.rel (%p353_p2) target bundleno = 1280 (0x500), region = 60 }
   0xb   : > { %v2697_v0 = vld [vmem:[%s4004_s2 + $0x8] sm:$0xff]  ;;  %s2422_s21 = sshll.u32 %s2945_s18, 5  ;;  %v2696_v1 = vld [vmem:[%s4004_s2] sm:$0xff]  ;;  %vm556_vm0 = vcmask 261120   ;;  %v2705_v7 = vld [vmem:[%s4006_s4 + $0x38] sm:$0xff]  ;;  %p419_p4 = scmp.lt.s32.totalorder %s2945_s18, 1 }
   0xc   : > { %p402_p3 = scmp.lt.s32.totalorder %s2422_s21, 63  ;;  %611 = vmatpush.bf16.msra.mxu0 %v2697_v0  ;;  %810 = vmatpush.bf16.msra.mxu1 %v2705_v7  ;;  %v2704_v9 = vld [vmem:[%s4006_s4 + $0x30] sm:$0xff]  ;;  %v2703_v10 = vld [vmem:[%s4006_s4 + $0x28] sm:$0xff]  ;;  %v2702_v11 = vld [vmem:[%s4006_s4 + $0x20] sm:$0xff] }
   0xd   : > { %v2701_v12 = vld [vmem:[%s4006_s4 + $0x18] sm:$0xff]  ;;  %v2700_v14 = vld [vmem:[%s4006_s4 + $0x10] sm:$0xff]  ;;  %v2699_v15 = vld [vmem:[%s4006_s4 + $0x8] sm:$0xff] }
   0xe   : > { %s4056_s21 = smov (!%p402_p3, %s2422_s21), 63  ;;  %v2698_v16 = vld [vmem:[%s4006_s4] sm:$0xff]  ;;  %v2713_v0 = vld [vmem:[%s4008_s6 + $0x38] sm:$0xff]  ;;  %v2711_v7 = vld [vmem:[%s4008_s6 + $0x28] sm:$0xff] }
   0xf   : > { %s2423_s24 = sshll.u32 %s4056_s21, 2  ;;  %v3008_v20 = vld [vmem:[%s4005_s3] ss:$0 sm:$0xff]  ;;  %1015 = vmatpush.bf16.msra.mxu2 %v2713_v0  ;;  %s2425_s14 = sshll.u32 %s4056_s21, 3 }
  0x10   : > { %612 = vmatpush.bf16.msra.mxu0 %v2696_v1  ;;  %s2962_s27 = scalar_lea.vmem %s4002_s0, %s2423_s24  ;;  %811 = vmatpush.bf16.msra.mxu1 %v2704_v9  ;;  %s3090_s19 = scalar_lea.vmem %s4003_s1, %s2425_s14 }
  0x11   : > { %v2680_v2 = vld [vmem:[%s2962_s27] sm:$0xff]  ;;  %v2681_v3 = vld [vmem:[%s2962_s27 + $0x8] sm:$0xff]  ;;  %v2682_v4 = vld [vmem:[%s2962_s27 + $0x10] sm:$0xff]  ;;  %s3219_s29 = scalar_lea.vmem %s4012_s10, %s2425_s14  ;;  %s2645_s21 = sshll.u32 %s2945_s18, 8 }
  0x12   : > { %v2683_v5 = vld [vmem:[%s2962_s27 + $0x18] sm:$0xff]  ;;  %v2684_v6 = vld [vmem:[%s2962_s27 + $0x20] sm:$0xff]  ;;  %v2685_v8 = vld [vmem:[%s2962_s27 + $0x28] sm:$0xff]  ;;  %s4058_s18 = smov (!%p419_p4, %s2945_s18), 1 }
  0x13   : > { %2501 = vmatmul.msk.bf16.vlgmr.msra.gmra.mxu0 %vm556_vm0, %v2680_v2  ;;  %v2686_v13 = vld [vmem:[%s2962_s27 + $0x30] sm:$0xff]  ;;  %v2687_v17 = vld [vmem:[%s2962_s27 + $0x38] sm:$0xff]  ;;  %v2688_v18 = vld [vmem:[%s2962_s27 + $0x40] sm:$0xff]  ;;  %s2428_s14 = sshll.u32 %s4058_s18, 3 }
  0x14   : > { %812 = vmatpush.bf16.msra.mxu1 %v2703_v10  ;;  %v2689_v27 = vld [vmem:[%s2962_s27 + $0x48] sm:$0xff]  ;;  %v2690_v35 = vld [vmem:[%s2962_s27 + $0x50] sm:$0xff]  ;;  %v2691_v43 = vld [vmem:[%s2962_s27 + $0x58] sm:$0xff] }
  0x15   : > { %v2692_v51 = vld [vmem:[%s2962_s27 + $0x60] sm:$0xff]  ;;  %v2693_v59 = vld [vmem:[%s2962_s27 + $0x68] sm:$0xff] }
  0x18   : > { %813 = vmatpush.bf16.msra.mxu1 %v2702_v11 }
  0x1c   : > { %814 = vmatpush.bf16.msra.mxu1 %v2701_v12  ;;  %v2709_v12 = vld [vmem:[%s4008_s6 + $0x18] sm:$0xff] }
  0x20   : > { %815 = vmatpush.bf16.msra.mxu1 %v2700_v14 }
  0x23   : > { %2502 = vmatmul.msk.bf16.gmra.mxu0 %vm556_vm0, %v2681_v3 }
  0x24   : > { %816 = vmatpush.bf16.msra.mxu1 %v2699_v15 }
  0x28   : > { %817 = vmatpush.bf16.msra.mxu1 %v2698_v16  ;;  %v2708_v16 = vld [vmem:[%s4008_s6 + $0x10] sm:$0xff] }
  0x33   : > { %2503 = vmatmul.msk.bf16.gmra.mxu0 %vm556_vm0, %v2682_v4  ;;  %v2712_v4 = vld [vmem:[%s4008_s6 + $0x30] sm:$0xff] }
  0x34   : > { %1016 = vmatpush.bf16.msra.mxu2 %v2712_v4 }
  0x38   : > { %1017 = vmatpush.bf16.msra.mxu2 %v2711_v7 }
  0x43   : > { %2504 = vmatmul.msk.bf16.gmra.mxu0 %vm556_vm0, %v2683_v5  ;;  %v2694_v5 = vld [vmem:[%s2962_s27 + $0x70] sm:$0xff] }
  0x53   : > { %2505 = vmatmul.msk.bf16.gmra.mxu0 %vm556_vm0, %v2684_v6 }
  0x63   : > { %2506 = vmatmul.msk.bf16.gmra.mxu0 %vm556_vm0, %v2685_v8  ;;  %v2710_v8 = vld [vmem:[%s4008_s6 + $0x20] sm:$0xff] }
  0x64   : > { %1018 = vmatpush.bf16.msra.mxu2 %v2710_v8 }
  0x68   : > { %1019 = vmatpush.bf16.msra.mxu2 %v2709_v12 }
  0x6c   : > { %1020 = vmatpush.bf16.msra.mxu2 %v2708_v16 }
  0x73   : > { %2507 = vmatmul.msk.bf16.gmra.mxu0 %vm556_vm0, %v2686_v13 }
  0x83   : > { %2508 = vmatmul.msk.bf16.gmra.mxu0 %vm556_vm0, %v2687_v17  ;;  %v2695_v17 = vld [vmem:[%s2962_s27 + $0x78] sm:$0xff]  ;;  %s422_s27 = scalar_lea.vmem %s4013_s11, %s2428_s14 }
  0x90   : > { %v614_v19 = vpop.f32.mrf.mxu0 }
  0x91   : > { %v615_v21 = vadd.f32 %v3008_v20, %v614_v19  ;;  %v2707_v19 = vld [vmem:[%s4008_s6 + $0x8] sm:$0xff] }
  0x92   : > { %1021 = vmatpush.bf16.msra.mxu2 %v2707_v19  ;;  %v1697_v19 = vld [vmem:[%s3090_s19 + $0x8] sm:$0xff] }
  0x93   : > { %2509 = vmatmul.msk.bf16.gmra.mxu0 %vm556_vm0, %v2688_v18  ;;  %v694_v24 = vmax.f32 %v615_v21, 0.0  ;;  %v2706_v21 = vld [vmem:[%s4008_s6] sm:$0xff] }
  0x96   : > { %1022 = vmatpush.bf16.msra.mxu2 %v2706_v21 }
  0x98   : > { %v616_v22 = vpop.f32.mrf.mxu0 }
  0x99   : > { %v617_v23 = vadd.f32 %v3008_v20, %v616_v22 }
  0x9b   : > { %v695_v25 = vmax.f32 %v617_v23, 0.0 }
  0x9d   : > { %v726_v26 = vpack.c.bf16 %v695_v25, %v694_v24 }
  0x9f   : > { %818 = vmatmul.bf16.vlgmr.msra.gmra.mxu1 %v726_v26 }
  0xa0   : > { %v619_v28 = vpop.f32.mrf.mxu0 }
  0xa1   : > { %v620_v29 = vadd.f32 %v3008_v20, %v619_v28 }
  0xa3   : > { %2510 = vmatmul.msk.bf16.gmra.mxu0 %vm556_vm0, %v2689_v27  ;;  %v696_v32 = vmax.f32 %v620_v29, 0.0 }
  0xa8   : > { %v621_v30 = vpop.f32.mrf.mxu0 }
  0xa9   : > { %v622_v31 = vadd.f32 %v3008_v20, %v621_v30 }
  0xab   : > { %v697_v33 = vmax.f32 %v622_v31, 0.0 }
  0xad   : > { %v727_v34 = vpack.c.bf16 %v697_v33, %v696_v32 }
  0xaf   : > { %823 = vmatmul.bf16.gmra.mxu1 %v727_v34 }
  0xb0   : > { %v624_v36 = vpop.f32.mrf.mxu0 }
  0xb1   : > { %v625_v37 = vadd.f32 %v3008_v20, %v624_v36  ;;  %v3070_v36 = vld [vmem:[%s4007_s5] ss:$0 sm:$0xff] }
  0xb3   : > { %2511 = vmatmul.msk.bf16.gmra.mxu0 %vm556_vm0, %v2690_v35  ;;  %v698_v40 = vmax.f32 %v625_v37, 0.0 }
  0xb8   : > { %v626_v38 = vpop.f32.mrf.mxu0 }
  0xb9   : > { %v627_v39 = vadd.f32 %v3008_v20, %v626_v38 }
  0xbb   : > { %v699_v41 = vmax.f32 %v627_v39, 0.0 }
  0xbd   : > { %v728_v42 = vpack.c.bf16 %v699_v41, %v698_v40 }
  0xbf   : > { %828 = vmatmul.bf16.gmra.mxu1 %v728_v42 }
  0xc0   : > { %v629_v44 = vpop.f32.mrf.mxu0 }
  0xc1   : > { %v630_v45 = vadd.f32 %v3008_v20, %v629_v44 }
  0xc3   : > { %2512 = vmatmul.msk.bf16.gmra.mxu0 %vm556_vm0, %v2691_v43  ;;  %v700_v48 = vmax.f32 %v630_v45, 0.0 }
  0xc8   : > { %v631_v46 = vpop.f32.mrf.mxu0 }
  0xc9   : > { %v632_v47 = vadd.f32 %v3008_v20, %v631_v46 }
  0xcb   : > { %v701_v49 = vmax.f32 %v632_v47, 0.0 }
  0xcd   : > { %v729_v50 = vpack.c.bf16 %v701_v49, %v700_v48 }
  0xcf   : > { %833 = vmatmul.bf16.gmra.mxu1 %v729_v50 }
  0xd0   : > { %v634_v52 = vpop.f32.mrf.mxu0 }
  0xd1   : > { %v635_v53 = vadd.f32 %v3008_v20, %v634_v52 }
  0xd3   : > { %2513 = vmatmul.msk.bf16.gmra.mxu0 %vm556_vm0, %v2692_v51  ;;  %v702_v56 = vmax.f32 %v635_v53, 0.0 }
  0xd8   : > { %v636_v54 = vpop.f32.mrf.mxu0 }
  0xd9   : > { %v637_v55 = vadd.f32 %v3008_v20, %v636_v54 }
  0xdb   : > { %v703_v57 = vmax.f32 %v637_v55, 0.0 }
  0xdd   : > { %v730_v58 = vpack.c.bf16 %v703_v57, %v702_v56 }
  0xdf   : > { %838 = vmatmul.bf16.gmra.mxu1 %v730_v58 }
  0xe0   : > { %v639_v60 = vpop.f32.mrf.mxu0 }
  0xe1   : > { %v640_v61 = vadd.f32 %v3008_v20, %v639_v60 }
  0xe3   : > { %2514 = vmatmul.msk.bf16.gmra.mxu0 %vm556_vm0, %v2693_v59  ;;  %v704_v1 = vmax.f32 %v640_v61, 0.0 }
  0xe8   : > { %v641_v62 = vpop.f32.mrf.mxu0 }
  0xe9   : > { %v642_v63 = vadd.f32 %v3008_v20, %v641_v62 }
  0xeb   : > { %v705_v2 = vmax.f32 %v642_v63, 0.0 }
  0xed   : > { %v731_v3 = vpack.c.bf16 %v705_v2, %v704_v1 }
  0xef   : > { %843 = vmatmul.bf16.gmra.mxu1 %v731_v3 }
  0xf0   : > { %v644_v6 = vpop.f32.mrf.mxu0 }
  0xf1   : > { %v645_v9 = vadd.f32 %v3008_v20, %v644_v6 }
  0xf3   : > { %2515 = vmatmul.msk.bf16.gmra.mxu0 %vm556_vm0, %v2694_v5  ;;  %v706_v13 = vmax.f32 %v645_v9, 0.0 }
  0xf8   : > { %v646_v10 = vpop.f32.mrf.mxu0 }
  0xf9   : > { %v647_v11 = vadd.f32 %v3008_v20, %v646_v10 }
  0xfb   : > { %v707_v14 = vmax.f32 %v647_v11, 0.0 }
  0xfd   : > { %v732_v15 = vpack.c.bf16 %v707_v14, %v706_v13 }
  0xff   : > { %848 = vmatmul.bf16.gmra.mxu1 %v732_v15 }
 0x100   : > { %v649_v18 = vpop.f32.mrf.mxu0 }
 0x101   : > { %v650_v22 = vadd.f32 %v3008_v20, %v649_v18  ;;  %v2877_v18 = vmov 0  }
 0x102   : > { %2735 = vset.pattern.permute.xlu2 %v2877_v18  ;;  %2734 = vset.pattern.permute.xlu1 %v2877_v18 }
 0x103   : > { %2516 = vmatmul.msk.bf16.gmra.mxu0 %vm556_vm0, %v2695_v17  ;;  %v708_v25 = vmax.f32 %v650_v22, 0.0  ;;  %1732 = vperm.xlu2 %2735, %v1697_v19  }
 0x104   : > { %2736 = vset.pattern.permute.xlu0 %v2877_v18 }
 0x108   : > { %v651_v23 = vpop.f32.mrf.mxu0 }
 0x109   : > { %v652_v24 = vadd.f32 %v3008_v20, %v651_v23 }
 0x10b   : > { %v709_v26 = vmax.f32 %v652_v24, 0.0 }
 0x10d   : > { %v733_v27 = vpack.c.bf16 %v709_v26, %v708_v25 }
 0x10f   : > { %853 = vmatmul.bf16.gmra.mxu1 %v733_v27 }
 0x110   : > { %v654_v28 = vpop.f32.mrf.mxu0 }
 0x111   : > { %v655_v29 = vadd.f32 %v3008_v20, %v654_v28 }
 0x113   : > { %v710_v32 = vmax.f32 %v655_v29, 0.0 }
 0x118   : > { %v656_v30 = vpop.f32.mrf.mxu0 }
 0x119   : > { %v657_v31 = vadd.f32 %v3008_v20, %v656_v30 }
 0x11b   : > { %v711_v33 = vmax.f32 %v657_v31, 0.0  ;;  %v1699_v31 = vld [vmem:[%s3090_s19 + $0x18] sm:$0xff] }
 0x11c   : > { %v819_v34 = vpop.f32.mrf.mxu1  ;;  %1738 = vperm.xlu2 %2735, %v1699_v31   ;;  %v1718_v31 = vld [vmem:[%s3090_s19 + $0xb0] sm:$0xff] }
 0x11d   : > { %v734_v35 = vpack.c.bf16 %v711_v33, %v710_v32  ;;  %v820_v38 = vadd.f32 %v3070_v36, %v819_v34 }
 0x11f   : > { %858 = vmatmul.bf16.gmra.mxu1 %v734_v35  ;;  %v899_v41 = vmax.f32 %v820_v38, 0.0 }
 0x120   : > { %v659_v37 = vpop.f32.mrf.mxu0 }
 0x121   : > { %v660_v42 = vadd.f32 %v3008_v20, %v659_v37  ;;  %v1701_v37 = vld [vmem:[%s3090_s19 + $0x28] sm:$0xff] }
 0x123   : > { %v712_v47 = vmax.f32 %v660_v42, 0.0 }
 0x124   : > { %v821_v39 = vpop.f32.mrf.mxu1  ;;  %1744 = vperm.xlu2 %2735, %v1701_v37  }
 0x125   : > { %v822_v40 = vadd.f32 %v3070_v36, %v821_v39 }
 0x127   : > { %v900_v43 = vmax.f32 %v822_v40, 0.0 }
 0x128   : > { %v661_v44 = vpop.f32.mrf.mxu0 }
 0x129   : > { %v662_v45 = vadd.f32 %v3008_v20, %v661_v44  ;;  %v931_v46 = vpack.c.bf16 %v900_v43, %v899_v41 }
 0x12b   : > { %v713_v48 = vmax.f32 %v662_v45, 0.0  ;;  %1023 = vmatmul.bf16.vlgmr.msra.gmra.mxu2 %v931_v46 }
 0x12c   : > { %v824_v49 = vpop.f32.mrf.mxu1 }
 0x12d   : > { %v735_v50 = vpack.c.bf16 %v713_v48, %v712_v47  ;;  %v825_v52 = vadd.f32 %v3070_v36, %v824_v49  ;;  %v1703_v48 = vld [vmem:[%s3090_s19 + $0x38] sm:$0xff] }
 0x12e   : > { %1750 = vperm.xlu2 %2735, %v1703_v48   ;;  %v1716_v48 = vld [vmem:[%s3090_s19 + $0xa0] sm:$0xff] }
 0x12f   : > { %863 = vmatmul.bf16.gmra.mxu1 %v735_v50  ;;  %v901_v55 = vmax.f32 %v825_v52, 0.0  ;;  %v1696_v50 = vld [vmem:[%s3090_s19] sm:$0xff] }
 0x130   : > { %v664_v51 = vpop.f32.mrf.mxu0  ;;  %1729 = vperm.xlu1 %2734, %v1696_v50  }
 0x131   : > { %v665_v56 = vadd.f32 %v3008_v20, %v664_v51 }
 0x133   : > { %v714_v61 = vmax.f32 %v665_v56, 0.0  ;;  %v1700_v56 = vld [vmem:[%s3090_s19 + $0x20] sm:$0xff] }
 0x134   : > { %v826_v53 = vpop.f32.mrf.mxu1 }
 0x135   : > { %v827_v54 = vadd.f32 %v3070_v36, %v826_v53 }
 0x137   : > { %v902_v57 = vmax.f32 %v827_v54, 0.0  ;;  %v1706_v54 = vld [vmem:[%s3090_s19 + $0x50] sm:$0xff] }
 0x138   : > { %v666_v58 = vpop.f32.mrf.mxu0  ;;  %1759 = vperm.xlu2 %2735, %v1706_v54   ;;  %1741 = vperm.xlu1 %2734, %v1700_v56   ;;  %v1723_v54 = vld [vmem:[%s3090_s19 + $0xd8] sm:$0xff] }
 0x139   : > { %v667_v59 = vadd.f32 %v3008_v20, %v666_v58  ;;  %v932_v60 = vpack.c.bf16 %v902_v57, %v901_v55 }
 0x13b   : > { %v715_v62 = vmax.f32 %v667_v59, 0.0  ;;  %1028 = vmatmul.bf16.gmra.mxu2 %v932_v60 }
 0x13c   : > { %v829_v63 = vpop.f32.mrf.mxu1 }
 0x13d   : > { %v736_v0 = vpack.c.bf16 %v715_v62, %v714_v61  ;;  %v830_v2 = vadd.f32 %v3070_v36, %v829_v63 }
 0x13f   : > { %868 = vmatmul.bf16.gmra.mxu1 %v736_v0  ;;  %v903_v5 = vmax.f32 %v830_v2, 0.0  ;;  %v1709_v2 = vld [vmem:[%s3090_s19 + $0x68] sm:$0xff] }
 0x140   : > { %v669_v1 = vpop.f32.mrf.mxu0  ;;  %1768 = vperm.xlu2 %2735, %v1709_v2  }
 0x141   : > { %v670_v6 = vadd.f32 %v3008_v20, %v669_v1 }
 0x143   : > { %v716_v11 = vmax.f32 %v670_v6, 0.0  ;;  %v2720_v6 = vld [vmem:[%s4010_s8 + $0x30] sm:$0xff] }
 0x144   : > { %v831_v3 = vpop.f32.mrf.mxu1 }
 0x145   : > { %v832_v4 = vadd.f32 %v3070_v36, %v831_v3  ;;  %v2721_v3 = vld [vmem:[%s4010_s8 + $0x38] sm:$0xff] }
 0x146   : > { %1220 = vmatpush.bf16.msra.mxu3 %v2721_v3 }
 0x147   : > { %v904_v7 = vmax.f32 %v832_v4, 0.0 }
 0x148   : > { %v671_v8 = vpop.f32.mrf.mxu0 }
 0x149   : > { %v672_v9 = vadd.f32 %v3008_v20, %v671_v8  ;;  %v933_v10 = vpack.c.bf16 %v904_v7, %v903_v5  ;;  %v1702_v5 = vld [vmem:[%s3090_s19 + $0x30] sm:$0xff] }
 0x14a   : > { %1747 = vperm.xlu1 %2734, %v1702_v5   ;;  %1221 = vmatpush.bf16.msra.mxu3 %v2720_v6 }
 0x14b   : > { %v717_v12 = vmax.f32 %v672_v9, 0.0  ;;  %1033 = vmatmul.bf16.gmra.mxu2 %v933_v10  ;;  %v1712_v10 = vld [vmem:[%s3090_s19 + $0x80] sm:$0xff] }
 0x14c   : > { %v834_v13 = vpop.f32.mrf.mxu1  ;;  %1777 = vperm.xlu2 %2735, %v1712_v10  }
 0x14d   : > { %v737_v14 = vpack.c.bf16 %v717_v12, %v716_v11  ;;  %v835_v16 = vadd.f32 %v3070_v36, %v834_v13  ;;  %v2719_v11 = vld [vmem:[%s4010_s8 + $0x28] sm:$0xff]  ;;  %v1704_v13 = vld [vmem:[%s3090_s19 + $0x40] sm:$0xff] }
 0x14e   : > { %1222 = vmatpush.bf16.msra.mxu3 %v2719_v11  ;;  %v1727_v11 = vld [vmem:[%s3090_s19 + $0xf8] sm:$0xff] }
 0x14f   : > { %873 = vmatmul.bf16.gmra.mxu1 %v737_v14  ;;  %v905_v22 = vmax.f32 %v835_v16, 0.0 }
 0x150   : > { %v674_v15 = vpop.f32.mrf.mxu0 }
 0x151   : > { %v675_v23 = vadd.f32 %v3008_v20, %v674_v15 }
 0x152   : > { %1753 = vperm.xlu1 %2734, %v1704_v13  }
 0x153   : > { %v718_v28 = vmax.f32 %v675_v23, 0.0 }
 0x154   : > { %v836_v17 = vpop.f32.mrf.mxu1 }
 0x155   : > { %v837_v21 = vadd.f32 %v3070_v36, %v836_v17  ;;  %v2718_v17 = vld [vmem:[%s4010_s8 + $0x20] sm:$0xff] }
 0x156   : > { %1223 = vmatpush.bf16.msra.mxu3 %v2718_v17 }
 0x157   : > { %v906_v24 = vmax.f32 %v837_v21, 0.0 }
 0x158   : > { %v676_v25 = vpop.f32.mrf.mxu0 }
 0x159   : > { %v677_v26 = vadd.f32 %v3008_v20, %v676_v25  ;;  %v934_v27 = vpack.c.bf16 %v906_v24, %v905_v22  ;;  %v1715_v25 = vld [vmem:[%s3090_s19 + $0x98] sm:$0xff] }
 0x15a   : > { %1786 = vperm.xlu2 %2735, %v1715_v25  }
 0x15b   : > { %v719_v29 = vmax.f32 %v677_v26, 0.0  ;;  %1038 = vmatmul.bf16.gmra.mxu2 %v934_v27  ;;  %v2717_v26 = vld [vmem:[%s4010_s8 + $0x18] sm:$0xff] }
 0x15c   : > { %v839_v30 = vpop.f32.mrf.mxu1  ;;  %1224 = vmatpush.bf16.msra.mxu3 %v2717_v26 }
 0x15d   : > { %v738_v32 = vpack.c.bf16 %v719_v29, %v718_v28  ;;  %v840_v34 = vadd.f32 %v3070_v36, %v839_v30  ;;  %v1707_v28 = vld [vmem:[%s3090_s19 + $0x58] sm:$0xff] }
 0x15e   : > { %1762 = vperm.xlu1 %2734, %v1707_v28  }
 0x15f   : > { %878 = vmatmul.bf16.gmra.mxu1 %v738_v32  ;;  %v907_v39 = vmax.f32 %v840_v34, 0.0  ;;  %v2715_v32 = vld [vmem:[%s4010_s8 + $0x8] sm:$0xff]  ;;  %v1710_v34 = vld [vmem:[%s3090_s19 + $0x70] sm:$0xff] }
 0x160   : > { %v679_v33 = vpop.f32.mrf.mxu0 }
 0x161   : > { %v680_v40 = vadd.f32 %v3008_v20, %v679_v33 }
 0x162   : > { %1795 = vperm.xlu2 %2735, %v1718_v31  }
 0x163   : > { %v720_v45 = vmax.f32 %v680_v40, 0.0 }
 0x164   : > { %v841_v35 = vpop.f32.mrf.mxu1 }
 0x165   : > { %v842_v38 = vadd.f32 %v3070_v36, %v841_v35 }
 0x166   : > { %1771 = vperm.xlu1 %2734, %v1710_v34  }
 0x167   : > { %v908_v41 = vmax.f32 %v842_v38, 0.0  ;;  %v2714_v38 = vld [vmem:[%s4010_s8] sm:$0xff] }
 0x168   : > { %v681_v42 = vpop.f32.mrf.mxu0 }
 0x169   : > { %v682_v43 = vadd.f32 %v3008_v20, %v681_v42  ;;  %v935_v44 = vpack.c.bf16 %v908_v41, %v907_v39  ;;  %v1719_v41 = vld [vmem:[%s3090_s19 + $0xb8] sm:$0xff]  ;;  %v1713_v42 = vld [vmem:[%s3090_s19 + $0x88] sm:$0xff] }
 0x16a   : > { %1798 = vperm.xlu2 %2735, %v1719_v41  }
 0x16b   : > { %v721_v46 = vmax.f32 %v682_v43, 0.0  ;;  %1043 = vmatmul.bf16.gmra.mxu2 %v935_v44  ;;  %v1698_v43 = vld [vmem:[%s3090_s19 + $0x10] sm:$0xff] }
 0x16c   : > { %v844_v47 = vpop.f32.mrf.mxu1  ;;  %1735 = vperm.xlu0 %2736, %v1698_v43  }
 0x16d   : > { %v739_v49 = vpack.c.bf16 %v721_v46, %v720_v45  ;;  %v845_v52 = vadd.f32 %v3070_v36, %v844_v47  ;;  %v1721_v46 = vld [vmem:[%s3090_s19 + $0xc8] sm:$0xff] }
 0x16e   : > { %1780 = vperm.xlu1 %2734, %v1713_v42  }
 0x16f   : > { %883 = vmatmul.bf16.gmra.mxu1 %v739_v49  ;;  %v909_v57 = vmax.f32 %v845_v52, 0.0  ;;  %v1705_v52 = vld [vmem:[%s3090_s19 + $0x48] sm:$0xff] }
 0x170   : > { %v684_v51 = vpop.f32.mrf.mxu0 }
 0x171   : > { %v685_v58 = vadd.f32 %v3008_v20, %v684_v51 }
 0x172   : > { %1804 = vperm.xlu2 %2735, %v1721_v46  }
 0x173   : > { %v722_v63 = vmax.f32 %v685_v58, 0.0  ;;  %v1708_v58 = vld [vmem:[%s3090_s19 + $0x60] sm:$0xff] }
 0x174   : > { %v846_v53 = vpop.f32.mrf.mxu1  ;;  %1756 = vperm.xlu0 %2736, %v1705_v52  }
 0x175   : > { %v847_v55 = vadd.f32 %v3070_v36, %v846_v53 }
 0x176   : > { %1789 = vperm.xlu1 %2734, %v1716_v48  }
 0x177   : > { %v910_v59 = vmax.f32 %v847_v55, 0.0  ;;  %v1720_v55 = vld [vmem:[%s3090_s19 + $0xc0] sm:$0xff] }
 0x178   : > { %v686_v60 = vpop.f32.mrf.mxu0 }
 0x179   : > { %v687_v61 = vadd.f32 %v3008_v20, %v686_v60  ;;  %v936_v62 = vpack.c.bf16 %v910_v59, %v909_v57  ;;  %v3162_v57 = vld [vmem:[%s4009_s7] ss:$0 sm:$0xff] }
 0x17a   : > { %1810 = vperm.xlu2 %2735, %v1723_v54  }
 0x17b   : > { %v723_v0 = vmax.f32 %v687_v61, 0.0  ;;  %1048 = vmatmul.bf16.gmra.mxu2 %v936_v62  ;;  %v1724_v61 = vld [vmem:[%s3090_s19 + $0xe0] sm:$0xff] }
 0x17c   : > { %v849_v1 = vpop.f32.mrf.mxu1  ;;  %1765 = vperm.xlu0 %2736, %v1708_v58  }
 0x17d   : > { %v740_v4 = vpack.c.bf16 %v723_v0, %v722_v63  ;;  %v850_v8 = vadd.f32 %v3070_v36, %v849_v1  ;;  %v1725_v0 = vld [vmem:[%s3090_s19 + $0xe8] sm:$0xff] }
 0x17e   : > { %1801 = vperm.xlu1 %2734, %v1720_v55  }
 0x17f   : > { %888 = vmatmul.bf16.gmra.mxu1 %v740_v4  ;;  %v911_v14 = vmax.f32 %v850_v8, 0.0  ;;  %v1711_v8 = vld [vmem:[%s3090_s19 + $0x78] sm:$0xff] }
 0x180   : > { %v689_v7 = vpop.f32.mrf.mxu0 }
 0x181   : > { %v690_v15 = vadd.f32 %v3008_v20, %v689_v7 }
 0x182   : > { %1813 = vperm.xlu2 %2735, %v1724_v61  }
 0x183   : > { %v724_v22 = vmax.f32 %v690_v15, 0.0 }
 0x184   : > { %v851_v9 = vpop.f32.mrf.mxu1  ;;  %1774 = vperm.xlu0 %2736, %v1711_v8  }
 0x185   : > { %v852_v12 = vadd.f32 %v3070_v36, %v851_v9 }
 0x186   : > { %1816 = vperm.xlu1 %2734, %v1725_v0  }
 0x187   : > { %v912_v16 = vmax.f32 %v852_v12, 0.0  ;;  %v1726_v12 = vld [vmem:[%s3090_s19 + $0xf0] sm:$0xff] }
 0x188   : > { %v691_v18 = vpop.f32.mrf.mxu0 }
 0x189   : > { %v692_v19 = vadd.f32 %v3008_v20, %v691_v18  ;;  %v937_v21 = vpack.c.bf16 %v912_v16, %v911_v14  ;;  %v2716_v20 = vld [vmem:[%s4010_s8 + $0x10] sm:$0xff] }
 0x18a   : > { %1225 = vmatpush.bf16.msra.mxu3 %v2716_v20  ;;  %1822 = vperm.xlu2 %2735, %v1727_v11   ;;  %v1714_v14 = vld [vmem:[%s3090_s19 + $0x90] sm:$0xff] }
 0x18b   : > { %v725_v23 = vmax.f32 %v692_v19, 0.0  ;;  %1053 = vmatmul.bf16.gmra.mxu2 %v937_v21 }
 0x18c   : > { %v854_v24 = vpop.f32.mrf.mxu1  ;;  %1783 = vperm.xlu0 %2736, %v1714_v14  }
 0x18d   : > { %v741_v27 = vpack.c.bf16 %v725_v23, %v724_v22  ;;  %v855_v29 = vadd.f32 %v3070_v36, %v854_v24 }
 0x18e   : > { %1226 = vmatpush.bf16.msra.mxu3 %v2715_v32  ;;  %1819 = vperm.xlu1 %2734, %v1726_v12  }
 0x18f   : > { %893 = vmatmul.bf16.gmra.mxu1 %v741_v27  ;;  %v913_v35 = vmax.f32 %v855_v29, 0.0  ;;  %v1717_v27 = vld [vmem:[%s3090_s19 + $0xa8] sm:$0xff] }
 0x192   : > { %1227 = vmatpush.bf16.msra.mxu3 %v2714_v38 }
 0x194   : > { %v856_v30 = vpop.f32.mrf.mxu1  ;;  %1792 = vperm.xlu0 %2736, %v1717_v27  }
 0x195   : > { %v857_v33 = vadd.f32 %v3070_v36, %v856_v30  ;;  %v1722_v30 = vld [vmem:[%s3090_s19 + $0xd0] sm:$0xff] }
 0x197   : > { %v914_v37 = vmax.f32 %v857_v33, 0.0 }
 0x199   : > { %v938_v39 = vpack.c.bf16 %v914_v37, %v913_v35 }
 0x19b   : > { %1058 = vmatmul.bf16.gmra.mxu2 %v938_v39 }
 0x19c   : > { %v859_v40 = vpop.f32.mrf.mxu1  ;;  %1807 = vperm.xlu0 %2736, %v1722_v30  }
 0x19d   : > { %v860_v44 = vadd.f32 %v3070_v36, %v859_v40 }
 0x19f   : > { %v915_v49 = vmax.f32 %v860_v44, 0.0 }
 0x1a4   : > { %v861_v45 = vpop.f32.mrf.mxu1 }
 0x1a5   : > { %v862_v47 = vadd.f32 %v3070_v36, %v861_v45 }
 0x1a7   : > { %v916_v50 = vmax.f32 %v862_v47, 0.0 }
 0x1a9   : > { %v939_v51 = vpack.c.bf16 %v916_v50, %v915_v49 }
 0x1ab   : > { %1063 = vmatmul.bf16.gmra.mxu2 %v939_v51 }
 0x1ac   : > { %v864_v53 = vpop.f32.mrf.mxu1 }
 0x1ad   : > { %v865_v59 = vadd.f32 %v3070_v36, %v864_v53 }
 0x1ae   : > { %v1024_v56 = vpop.f32.mrf.mxu2 }
 0x1af   : > { %v1025_v62 = vadd.f32 %v3162_v57, %v1024_v56  ;;  %v917_v2 = vmax.f32 %v865_v59, 0.0 }
 0x1b1   : > { %v1104_v5 = vmax.f32 %v1025_v62, 0.0 }
 0x1b4   : > { %v866_v60 = vpop.f32.mrf.mxu1 }
 0x1b5   : > { %v867_v63 = vadd.f32 %v3070_v36, %v866_v60 }
 0x1b6   : > { %v1026_v1 = vpop.f32.mrf.mxu2 }
 0x1b7   : > { %v918_v3 = vmax.f32 %v867_v63, 0.0  ;;  %v1027_v4 = vadd.f32 %v3162_v57, %v1026_v1 }
 0x1b9   : > { %v1105_v6 = vmax.f32 %v1027_v4, 0.0  ;;  %v940_v7 = vpack.c.bf16 %v918_v3, %v917_v2 }
 0x1bb   : > { %1068 = vmatmul.bf16.gmra.mxu2 %v940_v7  ;;  %v1136_v9 = vpack.c.bf16 %v1105_v6, %v1104_v5 }
 0x1bc   : > { %v869_v10 = vpop.f32.mrf.mxu1 }
 0x1bd   : > { %1228 = vmatmul.bf16.vlgmr.msra.gmra.mxu3 %v1136_v9  ;;  %v870_v15 = vadd.f32 %v3070_v36, %v869_v10 }
 0x1be   : > { %v1029_v13 = vpop.f32.mrf.mxu2 }
 0x1bf   : > { %v1030_v17 = vadd.f32 %v3162_v57, %v1029_v13  ;;  %v919_v21 = vmax.f32 %v870_v15, 0.0 }
 0x1c1   : > { %v1106_v24 = vmax.f32 %v1030_v17, 0.0 }
 0x1c4   : > { %v871_v16 = vpop.f32.mrf.mxu1 }
 0x1c5   : > { %v872_v18 = vadd.f32 %v3070_v36, %v871_v16 }
 0x1c6   : > { %v1031_v19 = vpop.f32.mrf.mxu2 }
 0x1c7   : > { %v920_v22 = vmax.f32 %v872_v18, 0.0  ;;  %v1032_v23 = vadd.f32 %v3162_v57, %v1031_v19 }
 0x1c9   : > { %v1107_v25 = vmax.f32 %v1032_v23, 0.0  ;;  %v941_v26 = vpack.c.bf16 %v920_v22, %v919_v21 }
 0x1cb   : > { %1073 = vmatmul.bf16.gmra.mxu2 %v941_v26  ;;  %v1137_v28 = vpack.c.bf16 %v1107_v25, %v1106_v24 }
 0x1cc   : > { %v874_v20 = vpop.f32.mrf.mxu1 }
 0x1cd   : > { %1233 = vmatmul.bf16.gmra.mxu3 %v1137_v28  ;;  %v875_v31 = vadd.f32 %v3070_v36, %v874_v20 }
 0x1ce   : > { %v1034_v29 = vpop.f32.mrf.mxu2 }
 0x1cf   : > { %v1035_v33 = vadd.f32 %v3162_v57, %v1034_v29  ;;  %v921_v37 = vmax.f32 %v875_v31, 0.0 }
 0x1d1   : > { %v1108_v40 = vmax.f32 %v1035_v33, 0.0 }
 0x1d4   : > { %v876_v32 = vpop.f32.mrf.mxu1 }
 0x1d5   : > { %v877_v34 = vadd.f32 %v3070_v36, %v876_v32 }
 0x1d6   : > { %v1036_v35 = vpop.f32.mrf.mxu2 }
 0x1d7   : > { %v922_v38 = vmax.f32 %v877_v34, 0.0  ;;  %v1037_v39 = vadd.f32 %v3162_v57, %v1036_v35 }
 0x1d9   : > { %v1109_v41 = vmax.f32 %v1037_v39, 0.0  ;;  %v942_v42 = vpack.c.bf16 %v922_v38, %v921_v37 }
 0x1db   : > { %1078 = vmatmul.bf16.gmra.mxu2 %v942_v42  ;;  %v1138_v43 = vpack.c.bf16 %v1109_v41, %v1108_v40 }
 0x1dc   : > { %v879_v44 = vpop.f32.mrf.mxu1 }
 0x1dd   : > { %1238 = vmatmul.bf16.gmra.mxu3 %v1138_v43  ;;  %v880_v46 = vadd.f32 %v3070_v36, %v879_v44 }
 0x1de   : > { %v1039_v45 = vpop.f32.mrf.mxu2 }
 0x1df   : > { %v1040_v48 = vadd.f32 %v3162_v57, %v1039_v45  ;;  %v923_v51 = vmax.f32 %v880_v46, 0.0 }
 0x1e1   : > { %v1110_v54 = vmax.f32 %v1040_v48, 0.0 }
 0x1e4   : > { %v881_v47 = vpop.f32.mrf.mxu1 }
 0x1e5   : > { %v882_v49 = vadd.f32 %v3070_v36, %v881_v47  ;;  %v4014_v47 = vlaneseq }
 0x1e6   : > { %v1041_v50 = vpop.f32.mrf.mxu2 }
 0x1e7   : > { %v924_v52 = vmax.f32 %v882_v49, 0.0  ;;  %v1042_v53 = vadd.f32 %v3162_v57, %v1041_v50 }
 0x1e9   : > { %v943_v55 = vpack.c.bf16 %v924_v52, %v923_v51  ;;  %v1111_v56 = vmax.f32 %v1042_v53, 0.0  ;;  %v3206_v51 = vand.u32 127, %v4014_v47  ;;  %v1730_v53 = vpop.permute.xlu1 %1729 }
 0x1eb   : > { %1083 = vmatmul.bf16.gmra.mxu2 %v943_v55  ;;  %v1139_v58 = vpack.c.bf16 %v1111_v56, %v1110_v54  ;;  %4025 = vst [vmem:[#allocation2_spill] sm:$0xff] %v3206_v51  ;;  %vm1824_vm1 = vcmp.eq.s32.totalorder %v3206_v51, %v1730_v53  ;;  %v3212_v54 = vld [vmem:[%s4011_s9] ss:$0 sm:$0xff]  ;;  %v4016_v56 = vmov 0.0   ;;  %vm1343_vm2 = vcmp.lt.s32.totalorder %v3206_v51, 8 }
 0x1ec   : > { %v884_v59 = vpop.f32.mrf.mxu1 }
 0x1ed   : > { %1243 = vmatmul.bf16.gmra.mxu3 %v1139_v58  ;;  %v885_v61 = vadd.f32 %v3070_v36, %v884_v59  ;;  %v2613_v58 = vsel %vm1824_vm1, 1.0, %v4016_v56 }
 0x1ee   : > { %v1044_v60 = vpop.f32.mrf.mxu2 }
 0x1ef   : > { %v1045_v63 = vadd.f32 %v3162_v57, %v1044_v60  ;;  %v925_v2 = vmax.f32 %v885_v61, 0.0 }
 0x1f1   : > { %v1112_v5 = vmax.f32 %v1045_v63, 0.0  ;;  %v1733_v63 = vpop.permute.xlu2 %1732 }
 0x1f2   : > { %vm1825_vm4 = vcmp.eq.s32.totalorder %v3206_v51, %v1733_v63 }
 0x1f4   : > { %v886_v62 = vpop.f32.mrf.mxu1 }
 0x1f5   : > { %v887_v0 = vadd.f32 %v3070_v36, %v886_v62 }
 0x1f6   : > { %v1046_v1 = vpop.f32.mrf.mxu2 }
 0x1f7   : > { %v926_v3 = vmax.f32 %v887_v0, 0.0  ;;  %v1047_v4 = vadd.f32 %v3162_v57, %v1046_v1 }
 0x1f9   : > { %v944_v6 = vpack.c.bf16 %v926_v3, %v925_v2  ;;  %v1113_v7 = vmax.f32 %v1047_v4, 0.0 }
 0x1fb   : > { %1088 = vmatmul.bf16.gmra.mxu2 %v944_v6  ;;  %v1140_v8 = vpack.c.bf16 %v1113_v7, %v1112_v5 }
 0x1fc   : > { %v889_v9 = vpop.f32.mrf.mxu1 }
 0x1fd   : > { %1248 = vmatmul.bf16.gmra.mxu3 %v1140_v8  ;;  %v890_v11 = vadd.f32 %v3070_v36, %v889_v9  ;;  %v1736_v9 = vpop.permute.xlu0 %1735 }
 0x1fe   : > { %v1049_v10 = vpop.f32.mrf.mxu2  ;;  %vm1826_vm3 = vcmp.eq.s32.totalorder %v3206_v51, %v1736_v9 }
 0x1ff   : > { %v1050_v13 = vadd.f32 %v3162_v57, %v1049_v10  ;;  %v927_v16 = vmax.f32 %v890_v11, 0.0  ;;  %v1739_v11 = vpop.permute.xlu2 %1738 }
 0x200   : > { %vm1827_vm5 = vcmp.eq.s32.totalorder %v3206_v51, %v1739_v11 }
 0x201   : > { %v1114_v19 = vmax.f32 %v1050_v13, 0.0 }
 0x204   : > { %v891_v12 = vpop.f32.mrf.mxu1 }
 0x205   : > { %v892_v14 = vadd.f32 %v3070_v36, %v891_v12  ;;  %v2615_v12 = vsel %vm1826_vm3, 1.0, %v4016_v56 }
 0x206   : > { %v1051_v15 = vpop.f32.mrf.mxu2 }
 0x207   : > { %v928_v17 = vmax.f32 %v892_v14, 0.0  ;;  %v1052_v18 = vadd.f32 %v3162_v57, %v1051_v15  ;;  %v2614_v14 = vsel %vm1825_vm4, 1.0, %v4016_v56 }
 0x209   : > { %v945_v21 = vpack.c.bf16 %v928_v17, %v927_v16  ;;  %v1115_v22 = vmax.f32 %v1052_v18, 0.0 }
 0x20b   : > { %1093 = vmatmul.bf16.gmra.mxu2 %v945_v21  ;;  %v1141_v23 = vpack.c.bf16 %v1115_v22, %v1114_v19 }
 0x20c   : > { %v894_v24 = vpop.f32.mrf.mxu1 }
 0x20d   : > { %1253 = vmatmul.bf16.gmra.mxu3 %v1141_v23  ;;  %v895_v26 = vadd.f32 %v3070_v36, %v894_v24  ;;  %v1745_v24 = vpop.permute.xlu2 %1744 }
 0x20e   : > { %v1054_v25 = vpop.f32.mrf.mxu2  ;;  %vm1829_vm7 = vcmp.eq.s32.totalorder %v3206_v51, %v1745_v24 }
 0x20f   : > { %v1055_v28 = vadd.f32 %v3162_v57, %v1054_v25  ;;  %v929_v30 = vmax.f32 %v895_v26, 0.0 }
 0x211   : > { %v1116_v33 = vmax.f32 %v1055_v28, 0.0  ;;  %v2616_v28 = vsel %vm1827_vm5, 1.0, %v4016_v56 }
 0x214   : > { %v896_v27 = vpop.f32.mrf.mxu1 }
 0x215   : > { %v897_v20 = vadd.f32 %v3070_v36, %v896_v27 }
 0x216   : > { %v1056_v29 = vpop.f32.mrf.mxu2 }
 0x217   : > { %v930_v31 = vmax.f32 %v897_v20, 0.0  ;;  %v1057_v32 = vadd.f32 %v3162_v57, %v1056_v29 }
 0x219   : > { %v946_v34 = vpack.c.bf16 %v930_v31, %v929_v30  ;;  %v1117_v35 = vmax.f32 %v1057_v32, 0.0  ;;  %v1742_v31 = vpop.permute.xlu1 %1741 }
 0x21a   : > { %vm1828_vm6 = vcmp.eq.s32.totalorder %v3206_v51, %v1742_v31 }
 0x21b   : > { %1098 = vmatmul.bf16.gmra.mxu2 %v946_v34  ;;  %v1142_v37 = vpack.c.bf16 %v1117_v35, %v1116_v33  ;;  %v2617_v35 = vsel %vm1828_vm6, 1.0, %v4016_v56 }
 0x21d   : > { %1258 = vmatmul.bf16.gmra.mxu3 %v1142_v37  ;;  %v1751_v37 = vpop.permute.xlu2 %1750 }
 0x21e   : > { %v1059_v38 = vpop.f32.mrf.mxu2  ;;  %vm1831_vm9 = vcmp.eq.s32.totalorder %v3206_v51, %v1751_v37 }
 0x21f   : > { %v1060_v39 = vadd.f32 %v3162_v57, %v1059_v38  ;;  %v2620_v9 = vsel %vm1831_vm9, 1.0, %v4016_v56 }
 0x221   : > { %v1118_v42 = vmax.f32 %v1060_v39, 0.0 }
 0x225   : > { %v3281_v53 = vpop.permute.xlu2 %1759 }
 0x226   : > { %v1061_v40 = vpop.f32.mrf.mxu2  ;;  %vm1834_vm12 = vcmp.eq.s32.totalorder %v3206_v51, %v3281_v53 }
 0x227   : > { %v1062_v41 = vadd.f32 %v3162_v57, %v1061_v40 }
 0x229   : > { %v1119_v43 = vmax.f32 %v1062_v41, 0.0 }
 0x22b   : > { %v1143_v36 = vpack.c.bf16 %v1119_v43, %v1118_v42  ;;  %v1748_v42 = vpop.permute.xlu1 %1747 }
 0x22c   : > { %vm1830_vm8 = vcmp.eq.s32.totalorder %v3206_v51, %v1748_v42 }
 0x22d   : > { %1263 = vmatmul.bf16.gmra.mxu3 %v1143_v36 }
 0x22e   : > { %v1064_v44 = vpop.f32.mrf.mxu2 }
 0x22f   : > { %v1065_v45 = vadd.f32 %v3162_v57, %v1064_v44 }
 0x231   : > { %v1120_v49 = vmax.f32 %v1065_v45, 0.0 }
 0x236   : > { %v1066_v46 = vpop.f32.mrf.mxu2 }
 0x237   : > { %v1067_v48 = vadd.f32 %v3162_v57, %v1066_v46 }
 0x239   : > { %v1121_v50 = vmax.f32 %v1067_v48, 0.0  ;;  %v2618_v48 = vsel %vm1829_vm7, 1.0, %v4016_v56 }
 0x23b   : > { %v1144_v52 = vpack.c.bf16 %v1121_v50, %v1120_v49 }
 0x23d   : > { %1268 = vmatmul.bf16.gmra.mxu3 %v1144_v52 }
 0x23e   : > { %v1069_v55 = vpop.f32.mrf.mxu2 }
 0x23f   : > { %v1070_v0 = vadd.f32 %v3162_v57, %v1069_v55 }
 0x240   : > { %v1229_v59 = vpop.f32.mrf.mxu3 }
 0x241   : > { %v1230_v60 = vadd.f32 %v3212_v54, %v1229_v59  ;;  %v1122_v4 = vmax.f32 %v1070_v0, 0.0  ;;  %v1754_v59 = vpop.permute.xlu1 %1753 }
 0x242   : > { %vm1832_vm10 = vcmp.eq.s32.totalorder %v3206_v51, %v1754_v59 }
 0x243   : > { %1309 = vst [vmem:[%s3219_s29] sm:$0xff] %v1230_v60  ;;  %v3227_v61 = vsel %vm1343_vm2, %v1230_v60, -1e+30  ;;  %v1920_v62 = vmul.f32 %v2613_v58, %v1230_v60 }
 0x244   : > { %1376 = vmax.xlane.f32.xlu0 %v3227_v61 }
 0x245   : > { %1952 = vadd.xlane.f32.xlu1 %v1920_v62 }
 0x246   : > { %v1071_v1 = vpop.f32.mrf.mxu2 }
 0x247   : > { %v1072_v2 = vadd.f32 %v3162_v57, %v1071_v1  ;;  %v3293_v1 = vpop.permute.xlu2 %1768 }
 0x248   : > { %v1231_v3 = vpop.f32.mrf.mxu3  ;;  %vm1837_vm15 = vcmp.eq.s32.totalorder %v3206_v51, %v3293_v1 }
 0x249   : > { %v1123_v5 = vmax.f32 %v1072_v2, 0.0  ;;  %v1232_v6 = vadd.f32 %v3212_v54, %v1231_v3  ;;  %v1763_v11 = vpop.permute.xlu1 %1762 }
 0x24a   : > { %vm1835_vm13 = vcmp.eq.s32.totalorder %v3206_v51, %v1763_v11 }
 0x24b   : > { %1310 = vst [vmem:[%s3219_s29 + $0x8] sm:$0xff] %v1232_v6  ;;  %v3236_v7 = vsel %vm1343_vm2, %v1232_v6, -1e+30  ;;  %v1145_v8 = vpack.c.bf16 %v1123_v5, %v1122_v4  ;;  %v1921_v16 = vmul.f32 %v2614_v14, %v1232_v6  ;;  %v2619_v4 = vsel %vm1830_vm8, 1.0, %v4016_v56 }
 0x24c   : > { %1378 = vmax.xlane.f32.xlu0 %v3236_v7 }
 0x24d   : > { %1273 = vmatmul.bf16.gmra.mxu3 %v1145_v8 }
 0x24e   : > { %v1074_v10 = vpop.f32.mrf.mxu2 }
 0x24f   : > { %v1075_v19 = vadd.f32 %v3162_v57, %v1074_v10 }
 0x250   : > { %v1234_v13 = vpop.f32.mrf.mxu3 }
 0x251   : > { %v1235_v15 = vadd.f32 %v3212_v54, %v1234_v13  ;;  %v1124_v25 = vmax.f32 %v1075_v19, 0.0  ;;  %v3306_v19 = vpop.permute.xlu2 %1777 }
 0x252   : > { %vm1840_vm3 = vcmp.eq.s32.totalorder %v3206_v51, %v3306_v19 }
 0x253   : > { %1311 = vst [vmem:[%s3219_s29 + $0x10] sm:$0xff] %v1235_v15  ;;  %v3247_v17 = vsel %vm1343_vm2, %v1235_v15, -1e+30  ;;  %v1922_v18 = vmul.f32 %v2615_v12, %v1235_v15  ;;  %v1757_v15 = vpop.permute.xlu0 %1756 }
 0x254   : > { %1380 = vmax.xlane.f32.xlu1 %v3247_v17  ;;  %1954 = vadd.xlane.f32.xlu0 %v1921_v16  ;;  %vm1833_vm11 = vcmp.eq.s32.totalorder %v3206_v51, %v1757_v15 }
 0x255   : > { %1956 = vadd.xlane.f32.xlu2 %v1922_v18 }
 0x256   : > { %v1076_v21 = vpop.f32.mrf.mxu2 }
 0x257   : > { %v1077_v22 = vadd.f32 %v3162_v57, %v1076_v21 }
 0x258   : > { %v1236_v23 = vpop.f32.mrf.mxu3 }
 0x259   : > { %v1125_v26 = vmax.f32 %v1077_v22, 0.0  ;;  %v1237_v27 = vadd.f32 %v3212_v54, %v1236_v23  ;;  %v2621_v22 = vsel %vm1832_vm10, 1.0, %v4016_v56 }
 0x25b   : > { %1312 = vst [vmem:[%s3219_s29 + $0x18] sm:$0xff] %v1237_v27  ;;  %v3258_v20 = vsel %vm1343_vm2, %v1237_v27, -1e+30  ;;  %v1146_v29 = vpack.c.bf16 %v1125_v26, %v1124_v25  ;;  %v1923_v30 = vmul.f32 %v2616_v28, %v1237_v27  ;;  %v3315_v25 = vpop.permute.xlu1 %1771  ;;  %v3319_v28 = vpop.permute.xlu0 %1765 }
 0x25c   : > { %1382 = vmax.xlane.f32.xlu1 %v3258_v20  ;;  %vm1836_vm14 = vcmp.eq.s32.totalorder %v3206_v51, %v3319_v28  ;;  %vm1838_vm0 = vcmp.eq.s32.totalorder %v3206_v51, %v3315_v25 }
 0x25d   : > { %1278 = vmatmul.bf16.gmra.mxu3 %v1146_v29  ;;  %1958 = vadd.xlane.f32.xlu0 %v1923_v30 }
 0x25e   : > { %v1079_v32 = vpop.f32.mrf.mxu2 }
 0x25f   : > { %v1080_v40 = vadd.f32 %v3162_v57, %v1079_v32 }
 0x260   : > { %v1239_v33 = vpop.f32.mrf.mxu3 }
 0x261   : > { %v1240_v34 = vadd.f32 %v3212_v54, %v1239_v33  ;;  %v1126_v44 = vmax.f32 %v1080_v40, 0.0 }
 0x263   : > { %1313 = vst [vmem:[%s3219_s29 + $0x20] sm:$0xff] %v1240_v34  ;;  %v3267_v38 = vsel %vm1343_vm2, %v1240_v34, -1e+30  ;;  %v1924_v39 = vmul.f32 %v2617_v35, %v1240_v34  ;;  %v3323_v34 = vpop.permute.xlu2 %1786  ;;  %v3331_v40 = vpop.permute.xlu1 %1780 }
 0x264   : > { %1384 = vmax.xlane.f32.xlu2 %v3267_v38  ;;  %v3334_v42 = vpop.permute.xlu0 %1774  ;;  %vm1841_vm5 = vcmp.eq.s32.totalorder %v3206_v51, %v3331_v40  ;;  %vm1843_vm7 = vcmp.eq.s32.totalorder %v3206_v51, %v3323_v34 }
 0x265   : > { %1960 = vadd.xlane.f32.xlu0 %v1924_v39  ;;  %vm1839_vm1 = vcmp.eq.s32.totalorder %v3206_v51, %v3334_v42 }
 0x266   : > { %v1081_v41 = vpop.f32.mrf.mxu2 }
 0x267   : > { %v1082_v43 = vadd.f32 %v3162_v57, %v1081_v41 }
 0x268   : > { %v1241_v36 = vpop.f32.mrf.mxu3 }
 0x269   : > { %v1127_v45 = vmax.f32 %v1082_v43, 0.0  ;;  %v1242_v46 = vadd.f32 %v3212_v54, %v1241_v36  ;;  %v2622_v36 = vsel %vm1833_vm11, 1.0, %v4016_v56 }
 0x26b   : > { %1314 = vst [vmem:[%s3219_s29 + $0x28] sm:$0xff] %v1242_v46  ;;  %v3278_v49 = vsel %vm1343_vm2, %v1242_v46, -1e+30  ;;  %v1147_v50 = vpack.c.bf16 %v1127_v45, %v1126_v44  ;;  %v1925_v52 = vmul.f32 %v2618_v48, %v1242_v46  ;;  %v3344_v46 = vpop.permute.xlu2 %1795  ;;  %v3352_v59 = vpop.permute.xlu1 %1789 }
 0x26c   : > { %1386 = vmax.xlane.f32.xlu2 %v3278_v49  ;;  %vm1844_vm6 = vcmp.eq.s32.totalorder %v3206_v51, %v3352_v59  ;;  %vm1846_vm8 = vcmp.eq.s32.totalorder %v3206_v51, %v3344_v46 }
 0x26d   : > { %1283 = vmatmul.bf16.gmra.mxu3 %v1147_v50  ;;  %1962 = vadd.xlane.f32.xlu1 %v1925_v52 }
 0x26e   : > { %v1084_v55 = vpop.f32.mrf.mxu2 }
 0x26f   : > { %v1085_v63 = vadd.f32 %v3162_v57, %v1084_v55 }
 0x270   : > { %v1244_v58 = vpop.f32.mrf.mxu3 }
 0x271   : > { %v1245_v60 = vadd.f32 %v3212_v54, %v1244_v58  ;;  %v1128_v5 = vmax.f32 %v1085_v63, 0.0  ;;  %v2623_v58 = vsel %vm1834_vm12, 1.0, %v4016_v56 }
 0x273   : > { %1315 = vst [vmem:[%s3219_s29 + $0x30] sm:$0xff] %v1245_v60  ;;  %v3287_v62 = vsel %vm1343_vm2, %v1245_v60, -1e+30  ;;  %v1926_v10 = vmul.f32 %v2619_v4, %v1245_v60  ;;  %v3356_v4 = vpop.permute.xlu0 %1783 }
 0x274   : > { %1388 = vmax.xlane.f32.xlu0 %v3287_v62  ;;  %vm1842_vm4 = vcmp.eq.s32.totalorder %v3206_v51, %v3356_v4 }
 0x276   : > { %v1086_v0 = vpop.f32.mrf.mxu2 }
 0x277   : > { %v1087_v2 = vadd.f32 %v3162_v57, %v1086_v0 }
 0x278   : > { %v1246_v3 = vpop.f32.mrf.mxu3 }
 0x279   : > { %v1129_v6 = vmax.f32 %v1087_v2, 0.0  ;;  %v1247_v8 = vadd.f32 %v3212_v54, %v1246_v3  ;;  %v2624_v2 = vsel %vm1835_vm13, 1.0, %v4016_v56 }
 0x27b   : > { %v1148_v12 = vpack.c.bf16 %v1129_v6, %v1128_v5  ;;  %1316 = vst [vmem:[%s3219_s29 + $0x38] sm:$0xff] %v1247_v8  ;;  %v3302_v13 = vsel %vm1343_vm2, %v1247_v8, -1e+30  ;;  %v1927_v14 = vmul.f32 %v2620_v9, %v1247_v8  ;;  %v3364_v9 = vpop.permute.xlu2 %1798  ;;  %v3374_v15 = vpop.permute.xlu0 %1792 }
 0x27c   : > { %1390 = vmax.xlane.f32.xlu1 %v3302_v13  ;;  %1964 = vadd.xlane.f32.xlu0 %v1926_v10  ;;  %vm1847_vm9 = vcmp.eq.s32.totalorder %v3206_v51, %v3364_v9  ;;  %vm1845_vm10 = vcmp.eq.s32.totalorder %v3206_v51, %v3374_v15 }
 0x27d   : > { %1288 = vmatmul.bf16.gmra.mxu3 %v1148_v12  ;;  %1966 = vadd.xlane.f32.xlu2 %v1927_v14  ;;  %v3367_v12 = vpop.permute.xlu1 %1801 }
 0x27e   : > { %v1089_v16 = vpop.f32.mrf.mxu2  ;;  %vm1848_vm12 = vcmp.eq.s32.totalorder %v3206_v51, %v3367_v12 }
 0x27f   : > { %v1090_v26 = vadd.f32 %v3162_v57, %v1089_v16 }
 0x280   : > { %v1249_v18 = vpop.f32.mrf.mxu3 }
 0x281   : > { %v1250_v21 = vadd.f32 %v3212_v54, %v1249_v18  ;;  %v1130_v31 = vmax.f32 %v1090_v26, 0.0 }
 0x283   : > { %1317 = vst [vmem:[%s3219_s29 + $0x40] sm:$0xff] %v1250_v21  ;;  %v3313_v23 = vsel %vm1343_vm2, %v1250_v21, -1e+30  ;;  %v1928_v24 = vmul.f32 %v2621_v22, %v1250_v21  ;;  %v3395_v28 = vpop.permute.xlu0 %1807 }
 0x284   : > { %4026 = vst [vmem:[#allocation3_spill] sm:$0xff] %v3395_v28 }
 0x285   : > { %1392 = vmax.xlane.f32.xlu2 %v3313_v23  ;;  %1968 = vadd.xlane.f32.xlu0 %v1928_v24  ;;  %v3381_v24 = vpop.permute.xlu2 %1804 }
 0x286   : > { %v1091_v27 = vpop.f32.mrf.mxu2 }
 0x287   : > { %v1092_v29 = vadd.f32 %v3162_v57, %v1091_v27 }
 0x288   : > { %v1251_v30 = vpop.f32.mrf.mxu3 }
 0x289   : > { %v1131_v32 = vmax.f32 %v1092_v29, 0.0  ;;  %v1252_v33 = vadd.f32 %v3212_v54, %v1251_v30  ;;  %v2625_v30 = vsel %vm1836_vm14, 1.0, %v4016_v56 }
 0x28b   : > { %v1149_v35 = vpack.c.bf16 %v1131_v32, %v1130_v31  ;;  %1318 = vst [vmem:[%s3219_s29 + $0x48] sm:$0xff] %v1252_v33  ;;  %v3328_v37 = vsel %vm1343_vm2, %v1252_v33, -1e+30  ;;  %v1929_v45 = vmul.f32 %v2622_v36, %v1252_v33 }
 0x28d   : > { %1293 = vmatmul.bf16.gmra.mxu3 %v1149_v35  ;;  %1394 = vmax.xlane.f32.xlu0 %v3328_v37 }
 0x28e   : > { %v1094_v39 = vpop.f32.mrf.mxu2 }
 0x28f   : > { %v1095_v48 = vadd.f32 %v3162_v57, %v1094_v39 }
 0x290   : > { %v1254_v41 = vpop.f32.mrf.mxu3 }
 0x291   : > { %v1255_v43 = vadd.f32 %v3212_v54, %v1254_v41  ;;  %v1132_v60 = vmax.f32 %v1095_v48, 0.0  ;;  %v2626_v41 = vsel %vm1837_vm15, 1.0, %v4016_v56  ;;  %vm1849_vm15 = vcmp.eq.s32.totalorder %v3206_v51, %v3381_v24 }
 0x293   : > { %1319 = vst [vmem:[%s3219_s29 + $0x50] sm:$0xff] %v1255_v43  ;;  %v3341_v44 = vsel %vm1343_vm2, %v1255_v43, -1e+30  ;;  %v1930_v3 = vmul.f32 %v2623_v58, %v1255_v43  ;;  %v3399_v43 = vpop.permute.xlu2 %1810 }
 0x294   : > { %1396 = vmax.xlane.f32.xlu1 %v3341_v44  ;;  %vm1851_vm11 = vcmp.eq.s32.totalorder %v3206_v51, %v3399_v43 }
 0x295   : > { %1970 = vadd.xlane.f32.xlu0 %v1929_v45 }
 0x296   : > { %v1096_v50 = vpop.f32.mrf.mxu2 }
 0x297   : > { %v1097_v52 = vadd.f32 %v3162_v57, %v1096_v50 }
 0x298   : > { %v1256_v55 = vpop.f32.mrf.mxu3 }
 0x299   : > { %v1133_v63 = vmax.f32 %v1097_v52, 0.0  ;;  %v1257_v0 = vadd.f32 %v3212_v54, %v1256_v55  ;;  %v2627_v55 = vsel %vm1838_vm0, 1.0, %v4016_v56 }
 0x29b   : > { %v1150_v53 = vpack.c.bf16 %v1133_v63, %v1132_v60  ;;  %1320 = vst [vmem:[%s3219_s29 + $0x58] sm:$0xff] %v1257_v0  ;;  %v3361_v5 = vsel %vm1343_vm2, %v1257_v0, -1e+30  ;;  %v1931_v6 = vmul.f32 %v2624_v2, %v1257_v0  ;;  %v3422_v25 = vpop.permute.xlu2 %1813 }
 0x29c   : > { %1398 = vmax.xlane.f32.xlu2 %v3361_v5  ;;  %1972 = vadd.xlane.f32.xlu1 %v1930_v3  ;;  %vm1852_vm13 = vcmp.eq.s32.totalorder %v3206_v51, %v3422_v25 }
 0x29d   : > { %1298 = vmatmul.bf16.gmra.mxu3 %v1150_v53  ;;  %1974 = vadd.xlane.f32.xlu0 %v1931_v6 }
 0x29e   : > { %v1099_v8 = vpop.f32.mrf.mxu2 }
 0x29f   : > { %v1100_v16 = vadd.f32 %v3162_v57, %v1099_v8  ;;  %v2628_v8 = vsel %vm1839_vm1, 1.0, %v4016_v56 }
 0x2a0   : > { %v1259_v10 = vpop.f32.mrf.mxu3 }
 0x2a1   : > { %v1260_v11 = vadd.f32 %v3212_v54, %v1259_v10  ;;  %v1134_v26 = vmax.f32 %v1100_v16, 0.0 }
 0x2a3   : > { %1321 = vst [vmem:[%s3219_s29 + $0x60] sm:$0xff] %v1260_v11  ;;  %v3372_v14 = vsel %vm1343_vm2, %v1260_v11, -1e+30  ;;  %v1932_v33 = vmul.f32 %v2625_v30, %v1260_v11  ;;  %v3443_v16 = vpop.permute.xlu2 %1822 }
 0x2a5   : > { %1400 = vmax.xlane.f32.xlu0 %v3372_v14 }
 0x2a6   : > { %v1101_v18 = vpop.f32.mrf.mxu2 }
 0x2a7   : > { %v1102_v21 = vadd.f32 %v3162_v57, %v1101_v18  ;;  %v3391_v57 = vpop.permute.xlu1 %1816 }
 0x2a8   : > { %v1261_v22 = vpop.f32.mrf.mxu3  ;;  %vm1853_vm14 = vcmp.eq.s32.totalorder %v3206_v51, %v3391_v57 }
 0x2a9   : > { %v1135_v27 = vmax.f32 %v1102_v21, 0.0  ;;  %v1262_v29 = vadd.f32 %v3212_v54, %v1261_v22 }
 0x2ab   : > { %v1151_v31 = vpack.c.bf16 %v1135_v27, %v1134_v26  ;;  %1322 = vst [vmem:[%s3219_s29 + $0x68] sm:$0xff] %v1262_v29  ;;  %v3388_v32 = vsel %vm1343_vm2, %v1262_v29, -1e+30  ;;  %v1933_v45 = vmul.f32 %v2626_v41, %v1262_v29  ;;  %v2629_v27 = vsel %vm1840_vm3, 1.0, %v4016_v56 }
 0x2ac   : > { %1402 = vmax.xlane.f32.xlu1 %v3388_v32  ;;  %vm2243_vm3 = vcmask 7168  }
 0x2ad   : > { %1303 = vmatmul.bf16.gmra.mxu3 %v1151_v31  ;;  %1976 = vadd.xlane.f32.xlu0 %v1932_v33 }
 0x2af   : > { %v3409_v1 = vpop.permute.xlu1 %1819 }
 0x2b0   : > { %v1264_v35 = vpop.f32.mrf.mxu3  ;;  %4027 = vst [vmem:[#allocation4_spill] sm:$0xff] %v3409_v1 }
 0x2b1   : > { %v1265_v39 = vadd.f32 %v3212_v54, %v1264_v35 }
 0x2b3   : > { %1323 = vst [vmem:[%s3219_s29 + $0x70] sm:$0xff] %v1265_v39  ;;  %v3404_v36 = vsel %vm1343_vm2, %v1265_v39, -1e+30  ;;  %v1934_v63 = vmul.f32 %v2627_v55, %v1265_v39 }
 0x2b4   : > { %1404 = vmax.xlane.f32.xlu2 %v3404_v36 }
 0x2b5   : > { %1978 = vadd.xlane.f32.xlu0 %v1933_v45 }
 0x2b7   : > { %v3411_v48 = vpop.xlane.xlu0 %1376 }
 0x2b8   : > { %v1440_v50 = vsub.f32 %v3227_v61, %v3411_v48  ;;  %v1266_v52 = vpop.f32.mrf.mxu3  ;;  %v3427_v61 = vpop.xlane.xlu1 %1952 }
 0x2b9   : > { %v1267_v58 = vadd.f32 %v3212_v54, %v1266_v52 }
 0x2ba   : > { %v1472_v60 = vmul.f32 1.442695, %v1440_v50 }
 0x2bb   : > { %1324 = vst [vmem:[%s3219_s29 + $0x78] sm:$0xff] %v1267_v58  ;;  %v3420_v0 = vsel %vm1343_vm2, %v1267_v58, -1e+30  ;;  %v1935_v11 = vmul.f32 %v2628_v8, %v1267_v58  ;;  %v2631_v58 = vsel %vm1842_vm4, 1.0, %v4016_v56 }
 0x2bc   : > { %2741 = vpow2.f32 %v1472_v60  ;;  %1980 = vadd.xlane.f32.xlu2 %v1934_v63 }
 0x2bd   : > { %1406 = vmax.xlane.f32.xlu0 %v3420_v0 }
 0x2bf   : > { %v3429_v3 = vpop.xlane.xlu0 %1378 }
 0x2c0   : > { %v1269_v2 = vpop.f32.mrf.mxu3  ;;  %v1441_v42 = vsub.f32 %v3236_v7, %v3429_v3 }
 0x2c1   : > { %v1270_v53 = vadd.f32 %v3212_v54, %v1269_v2 }
 0x2c2   : > { %v2742_v6 = vpop.eup %2741  ;;  %v1474_v29 = vmul.f32 1.442695, %v1441_v42 }
 0x2c3   : > { %1325 = vst [vmem:[%s3219_s29 + $0x80] sm:$0xff] %v1270_v53  ;;  %v3436_v10 = vsel %vm1343_vm2, %v1270_v53, -1e+30  ;;  %v1936_v19 = vmul.f32 %v2629_v27, %v1270_v53 }
 0x2c4   : > { %1408 = vmax.xlane.f32.xlu1 %v3436_v10  ;;  %1536 = vadd.xlane.f32.xlu2 %v2742_v6  ;;  %v2630_v6 = vsel %vm1841_vm5, 1.0, %v4016_v56 }
 0x2c5   : > { %1982 = vadd.xlane.f32.xlu0 %v1935_v11 }
 0x2c7   : > { %v3445_v18 = vpop.xlane.xlu1 %1380  ;;  %v3451_v31 = vpop.xlane.xlu0 %1954 }
 0x2c8   : > { %v1442_v21 = vsub.f32 %v3247_v17, %v3445_v18  ;;  %v1271_v22 = vpop.f32.mrf.mxu3  ;;  %v3459_v17 = vpop.xlane.xlu2 %1956 }
 0x2c9   : > { %v1272_v26 = vadd.f32 %v3212_v54, %v1271_v22 }
 0x2ca   : > { %v1476_v30 = vmul.f32 1.442695, %v1442_v21 }
 0x2cb   : > { %1326 = vst [vmem:[%s3219_s29 + $0x88] sm:$0xff] %v1272_v26  ;;  %v3456_v7 = vsel %vm1343_vm2, %v1272_v26, -1e+30  ;;  %v1937_v4 = vmul.f32 %v2630_v6, %v1272_v26 }
 0x2cc   : > { %2743 = vpow2.f32 %v1476_v30  ;;  %1410 = vmax.xlane.f32.xlu2 %v3456_v7 }
 0x2cd   : > { %1984 = vadd.xlane.f32.xlu0 %v1936_v19  ;;  %2745 = vpow2.f32 %v1474_v29  ;;  %v2633_v19 = vsel %vm1844_vm6, 1.0, %v4016_v56 }
 0x2cf   : > { %v3461_v33 = vpop.xlane.xlu1 %1382 }
 0x2d0   : > { %v1443_v35 = vsub.f32 %v3258_v20, %v3461_v33  ;;  %v1274_v39 = vpop.f32.mrf.mxu3  ;;  %v3469_v55 = vpop.xlane.xlu0 %1958 }
 0x2d1   : > { %v1275_v41 = vadd.f32 %v3212_v54, %v1274_v39 }
 0x2d2   : > { %v2744_v45 = vpop.eup %2743  ;;  %v1478_v50 = vmul.f32 1.442695, %v1443_v35 }
 0x2d3   : > { %1327 = vst [vmem:[%s3219_s29 + $0x90] sm:$0xff] %v1275_v41  ;;  %1540 = vadd.xlane.f32.xlu1 %v2744_v45  ;;  %v2746_v52 = vpop.eup %2745  ;;  %v1938_v2 = vmul.f32 %v2631_v58, %v1275_v41  ;;  %v3499_v27 = vsel %vm1343_vm2, %v1275_v41, -1e+30  ;;  %v2632_v45 = vsel %vm1843_vm7, 1.0, %v4016_v56 }
 0x2d4   : > { %2747 = vpow2.f32 %v1478_v50 }
 0x2d5   : > { %1538 = vadd.xlane.f32.xlu0 %v2746_v52 }
 0x2d7   : > { %v3473_v20 = vpop.xlane.xlu2 %1384 }
 0x2d8   : > { %v1276_v60 = vpop.f32.mrf.mxu3  ;;  %v3479_v8 = vpop.xlane.xlu0 %1960 }
 0x2d9   : > { %v1277_v63 = vadd.f32 %v3212_v54, %v1276_v60 }
 0x2da   : > { %v2748_v53 = vpop.eup %2747 }
 0x2db   : > { %1328 = vst [vmem:[%s3219_s29 + $0x98] sm:$0xff] %v1277_v63  ;;  %1988 = vadd.xlane.f32.xlu1 %v1938_v2  ;;  %1542 = vadd.xlane.f32.xlu2 %v2748_v53  ;;  %v3486_v21 = vsel %vm1343_vm2, %v1277_v63, -1e+30  ;;  %v1939_v34 = vmul.f32 %v2632_v45, %v1277_v63 }
 0x2dd   : > { %1986 = vadd.xlane.f32.xlu0 %v1937_v4 }
 0x2df   : > { %v3481_v40 = vpop.xlane.xlu2 %1386 }
 0x2e0   : > { %v1279_v11 = vpop.f32.mrf.mxu3  ;;  %v1445_v22 = vsub.f32 %v3278_v49, %v3481_v40  ;;  %v1444_v49 = vsub.f32 %v3267_v38, %v3473_v20  ;;  %v3521_v6 = vpop.xlane.xlu1 %1962 }
 0x2e1   : > { %v1280_v42 = vadd.f32 %v3212_v54, %v1279_v11 }
 0x2e2   : > { %v1482_v29 = vmul.f32 1.442695, %v1445_v22  ;;  %v1480_v50 = vmul.f32 1.442695, %v1444_v49 }
 0x2e3   : > { %1329 = vst [vmem:[%s3219_s29 + $0xa0] sm:$0xff] %v1280_v42  ;;  %1414 = vmax.xlane.f32.xlu1 %v3486_v21  ;;  %v3494_v26 = vsel %vm1343_vm2, %v1280_v42, -1e+30  ;;  %v1940_v59 = vmul.f32 %v2633_v19, %v1280_v42 }
 0x2e4   : > { %1416 = vmax.xlane.f32.xlu2 %v3494_v26  ;;  %2749 = vpow2.f32 %v1482_v29 }
 0x2e5   : > { %1412 = vmax.xlane.f32.xlu0 %v3499_v27 }
 0x2e7   : > { %v3508_v30 = vpop.xlane.xlu0 %1388 }
 0x2e8   : > { %v1446_v35 = vsub.f32 %v3287_v62, %v3508_v30  ;;  %v1281_v39 = vpop.f32.mrf.mxu3 }
 0x2e9   : > { %v1282_v41 = vadd.f32 %v3212_v54, %v1281_v39 }
 0x2ea   : > { %v1484_v38 = vmul.f32 1.442695, %v1446_v35  ;;  %v2750_v60 = vpop.eup %2749 }
 0x2eb   : > { %1330 = vst [vmem:[%s3219_s29 + $0xa8] sm:$0xff] %v1282_v41  ;;  %1992 = vadd.xlane.f32.xlu1 %v1940_v59  ;;  %v3546_v39 = vsel %vm1343_vm2, %v1282_v41, -1e+30 }
 0x2ec   : > { %2751 = vpow2.f32 %v1484_v38  ;;  %v2636_v38 = vsel %vm1847_vm9, 1.0, %v4016_v56 }
 0x2ed   : > { %1990 = vadd.xlane.f32.xlu0 %v1939_v34  ;;  %2753 = vpow2.f32 %v1480_v50 }
 0x2ef   : > { %v3516_v52 = vpop.xlane.xlu0 %1964  ;;  %v3529_v49 = vpop.xlane.xlu1 %1390 }
 0x2f0   : > { %v1284_v58 = vpop.f32.mrf.mxu3  ;;  %v3518_v62 = vpop.xlane.xlu2 %1966  ;;  %v1447_v59 = vsub.f32 %v3302_v13, %v3529_v49 }
 0x2f1   : > { %v1285_v2 = vadd.f32 %v3212_v54, %v1284_v58 }
 0x2f2   : > { %v2752_v53 = vpop.eup %2751  ;;  %v1486_v34 = vmul.f32 1.442695, %v1447_v59 }
 0x2f3   : > { %1331 = vst [vmem:[%s3219_s29 + $0xb0] sm:$0xff] %v1285_v2  ;;  %1546 = vadd.xlane.f32.xlu1 %v2750_v60  ;;  %1548 = vadd.xlane.f32.xlu2 %v2752_v53  ;;  %v2754_v4 = vpop.eup %2753  ;;  %v3533_v29 = vsel %vm1343_vm2, %v1285_v2, -1e+30  ;;  %v2634_v60 = vsel %vm1845_vm10, 1.0, %v4016_v56 }
 0x2f4   : > { %v1941_v15 = vmul.f32 %v2634_v60, %v1282_v41 }
 0x2f5   : > { %1544 = vadd.xlane.f32.xlu0 %v2754_v4 }
 0x2f8   : > { %v1286_v63 = vpop.f32.mrf.mxu3  ;;  %v3525_v42 = vpop.xlane.xlu2 %1392 }
 0x2f9   : > { %v1287_v11 = vadd.f32 %v3212_v54, %v1286_v63  ;;  %v3527_v22 = vpop.xlane.xlu0 %1968  ;;  %v1448_v35 = vsub.f32 %v3313_v23, %v3525_v42  ;;  %v2635_v23 = vsel %vm1846_vm8, 1.0, %v4016_v56 }
 0x2fa   : > { %v1942_v13 = vmul.f32 %v2635_v23, %v1285_v2 }
 0x2fb   : > { %1332 = vst [vmem:[%s3219_s29 + $0xb8] sm:$0xff] %v1287_v11  ;;  %1420 = vmax.xlane.f32.xlu1 %v3533_v29  ;;  %v3539_v19 = vsel %vm1343_vm2, %v1287_v11, -1e+30  ;;  %v1488_v45 = vmul.f32 1.442695, %v1448_v35  ;;  %v1943_v53 = vmul.f32 %v2636_v38, %v1287_v11 }
 0x2fc   : > { %1422 = vmax.xlane.f32.xlu2 %v3539_v19 }
 0x2fd   : > { %1418 = vmax.xlane.f32.xlu0 %v3546_v39  ;;  %2755 = vpow2.f32 %v1488_v45 }
 0x2fe   : > { %2757 = vpow2.f32 %v1486_v34 }
 0x300   : > { %v1289_v50 = vpop.f32.mrf.mxu3 }
 0x301   : > { %v1290_v46 = vadd.f32 %v3212_v54, %v1289_v50  ;;  %v3560_v58 = vpop.xlane.xlu0 %1394 }
 0x302   : > { %v1449_v9 = vsub.f32 %v3328_v37, %v3560_v58 }
 0x303   : > { %1333 = vst [vmem:[%s3219_s29 + $0xc0] sm:$0xff] %v1290_v46  ;;  %1996 = vadd.xlane.f32.xlu1 %v1942_v13  ;;  %v2756_v59 = vpop.eup %2755 }
 0x304   : > { %v1490_v4 = vmul.f32 1.442695, %v1449_v9  ;;  %1998 = vadd.xlane.f32.xlu2 %v1943_v53  ;;  %v2758_v37 = vpop.eup %2757  ;;  %v3599_v9 = vsel %vm1343_vm2, %v1290_v46, -1e+30 }
 0x305   : > { %1994 = vadd.xlane.f32.xlu0 %v1941_v15 }
 0x306   : > { %2759 = vpow2.f32 %v1490_v4 }
 0x307   : > { %v3577_v50 = vpop.xlane.xlu1 %1396 }
 0x308   : > { %v1291_v63 = vpop.f32.mrf.mxu3  ;;  %v1450_v53 = vsub.f32 %v3341_v44, %v3577_v50  ;;  %v2637_v44 = vsel %vm1848_vm12, 1.0, %v4016_v56 }
 0x309   : > { %v3567_v35 = vadd.f32 %v3212_v54, %v1291_v63  ;;  %v3569_v2 = vpop.xlane.xlu0 %1970  ;;  %v1944_v12 = vmul.f32 %v2637_v44, %v1290_v46 }
 0x30a   : > { %v1492_v4 = vmul.f32 1.442695, %v1450_v53 }
 0x30b   : > { %1334 = vst [vmem:[%s3219_s29 + $0xc8] sm:$0xff] %v3567_v35  ;;  %1552 = vadd.xlane.f32.xlu1 %v2756_v59  ;;  %v3587_v60 = vsel %vm1343_vm2, %v3567_v35, -1e+30 }
 0x30c   : > { %v2760_v11 = vpop.eup %2759 }
 0x30d   : > { %1554 = vadd.xlane.f32.xlu2 %v2760_v11  ;;  %1550 = vadd.xlane.f32.xlu0 %v2758_v37  ;;  %v2640_v11 = vsel %vm1851_vm11, 1.0, %v4016_v56 }
 0x30f   : > { %v3573_v41 = vpop.xlane.xlu2 %1398 }
 0x310   : > { %v1451_v23 = vsub.f32 %v3361_v5, %v3573_v41  ;;  %v1294_v45 = vpop.f32.mrf.mxu3 }
 0x311   : > { %v3580_v38 = vadd.f32 %v3212_v54, %v1294_v45  ;;  %v3582_v34 = vpop.xlane.xlu0 %1974  ;;  %v3616_v45 = vpop.xlane.xlu1 %1972 }
 0x312   : > { %v1494_v13 = vmul.f32 1.442695, %v1451_v23 }
 0x313   : > { %4028 = vst [vmem:[#allocation5_spill] sm:$0xff] %v3580_v38  ;;  %1426 = vmax.xlane.f32.xlu1 %v3587_v60  ;;  %v3595_v5 = vsel %vm1343_vm2, %v3580_v38, -1e+30 }
 0x314   : > { %1335 = vst [vmem:[%s3219_s29 + $0xd0] sm:$0xff] %v3580_v38  ;;  %2761 = vpow2.f32 %v1494_v13 }
 0x315   : > { %1428 = vmax.xlane.f32.xlu2 %v3595_v5  ;;  %1424 = vmax.xlane.f32.xlu0 %v3599_v9  ;;  %2763 = vpow2.f32 %v1492_v4 }
 0x318   : > { %v1296_v15 = vpop.f32.mrf.mxu3 }
 0x319   : > { %v1297_v63 = vadd.f32 %v3212_v54, %v1296_v15  ;;  %v3610_v59 = vpop.xlane.xlu0 %1400 }
 0x31a   : > { %v2762_v37 = vpop.eup %2761  ;;  %v1452_v23 = vsub.f32 %v3372_v14, %v3610_v59  ;;  %v2641_v14 = vsel %vm1852_vm13, 1.0, %v4016_v56 }
 0x31b   : > { %1336 = vst [vmem:[%s3219_s29 + $0xd8] sm:$0xff] %v1297_v63  ;;  %1558 = vadd.xlane.f32.xlu1 %v2762_v37  ;;  %v3619_v43 = vmul.f32 %v2640_v11, %v1297_v63  ;;  %v2764_v1 = vpop.eup %2763 }
 0x31c   : > { %v1496_v13 = vmul.f32 1.442695, %v1452_v23 }
 0x31d   : > { %4029 = vst [vmem:[#allocation6_spill] sm:$0xff] %v3619_v43  ;;  %2000 = vadd.xlane.f32.xlu0 %v1944_v12 }
 0x31e   : > { %2765 = vpow2.f32 %v1496_v13 }
 0x31f   : > { %v3627_v38 = vpop.xlane.xlu1 %1402 }
 0x320   : > { %v1299_v53 = vpop.f32.mrf.mxu3  ;;  %v1453_v25 = vsub.f32 %v3388_v32, %v3627_v38 }
 0x321   : > { %v1300_v15 = vadd.f32 %v3212_v54, %v1299_v53  ;;  %v3624_v47 = vpop.xlane.xlu0 %1976  ;;  %v2642_v53 = vsel %vm1853_vm14, 1.0, %v4016_v56 }
 0x323   : > { %1337 = vst [vmem:[%s3219_s29 + $0xe0] sm:$0xff] %v1300_v15  ;;  %v3632_v46 = vsel %vm1343_vm2, %v1300_v15, -1e+30  ;;  %v3634_v4 = vmul.f32 %v2641_v14, %v1300_v15  ;;  %v1498_v15 = vmul.f32 1.442695, %v1453_v25 }
 0x324   : > { %v2766_v37 = vpop.eup %2765  ;;  %1432 = vmax.xlane.f32.xlu1 %v3632_v46 }
 0x325   : > { %1560 = vadd.xlane.f32.xlu2 %v2766_v37  ;;  %1556 = vadd.xlane.f32.xlu0 %v2764_v1 }
 0x327   : > { %v3641_v11 = vpop.xlane.xlu2 %1404 }
 0x328   : > { %v1454_v44 = vsub.f32 %v3404_v36, %v3641_v11  ;;  %v1301_v23 = vpop.f32.mrf.mxu3  ;;  %v3658_v36 = vsel %vm1343_vm2, %v1297_v63, -1e+30 }
 0x329   : > { %v1302_v12 = vadd.f32 %v3212_v54, %v1301_v23  ;;  %v3646_v13 = vpop.xlane.xlu0 %1978 }
 0x32a   : > { %v1500_v1 = vmul.f32 1.442695, %v1454_v44 }
 0x32b   : > { %1338 = vst [vmem:[%s3219_s29 + $0xe8] sm:$0xff] %v1302_v12  ;;  %v3652_v32 = vsel %vm1343_vm2, %v1302_v12, -1e+30  ;;  %v3654_v57 = vmul.f32 %v2642_v53, %v1302_v12 }
 0x32c   : > { %2767 = vpow2.f32 %v1500_v1 }
 0x32d   : > { %4030 = vst [vmem:[#allocation7_spill] sm:$0xff] %v3654_v57  ;;  %1434 = vmax.xlane.f32.xlu2 %v3652_v32  ;;  %1430 = vmax.xlane.f32.xlu0 %v3658_v36  ;;  %2769 = vpow2.f32 %v1498_v15 }
 0x32f   : > { %v3662_v14 = vpop.xlane.xlu2 %1980 }
 0x330   : > { %v1304_v37 = vpop.f32.mrf.mxu3 }
 0x331   : > { %v3665_v25 = vadd.f32 %v3212_v54, %v1304_v37  ;;  %v3667_v44 = vpop.xlane.xlu0 %1406 }
 0x332   : > { %4032 = vst [vmem:[#allocation9_spill] sm:$0xff] %v3667_v44  ;;  %v2768_v23 = vpop.eup %2767  ;;  %v1455_v12 = vsub.f32 %v3420_v0, %v3667_v44  ;;  %v4039_v44 = vlaneseq }
 0x333   : > { %4031 = vst [vmem:[#allocation8_spill] sm:$0xff] %v3665_v25  ;;  %1564 = vadd.xlane.f32.xlu1 %v2768_v23  ;;  %v2770_v63 = vpop.eup %2769 }
 0x334   : > { %1339 = vst [vmem:[%s3219_s29 + $0xf0] sm:$0xff] %v3665_v25  ;;  %v1502_v53 = vmul.f32 1.442695, %v1455_v12 }
 0x335   : > { %1562 = vadd.xlane.f32.xlu0 %v2770_v63  ;;  %v4037_v63 = vmov 0.0  }
 0x336   : > { %2771 = vpow2.f32 %v1502_v53  ;;  %v2638_v53 = vsel %vm1849_vm15, 1.0, %v4037_v63 }
 0x337   : > { %v3673_v15 = vpop.xlane.xlu1 %1408  ;;  %v1537_v1 = vpop.xlane.xlu2 %1536 }
 0x338   : > { %4033 = vst [vmem:[#allocation10_spill] sm:$0xff] %v3673_v15  ;;  %v1456_v37 = vsub.f32 %v3436_v10, %v3673_v15  ;;  %v1306_v56 = vpop.f32.mrf.mxu3  ;;  %v3693_v10 = vsel %vm1343_vm2, %v3665_v25, -1e+30  ;;  %v1945_v15 = vmul.f32 %v2638_v53, %v3567_v35  ;;  %v3708_v25 = vshrl.u32 %v4039_v44, 7 }
 0x339   : > { %v3678_v57 = vadd.f32 %v3212_v54, %v1306_v56  ;;  %v3680_v43 = vpop.xlane.xlu0 %1982 }
 0x33a   : > { %4035 = vst [vmem:[#allocation12_spill] sm:$0xff] %v3680_v43  ;;  %v1504_v0 = vmul.f32 1.442695, %v1456_v37  ;;  %v2020_v28 = vadd.s32 24, %v3708_v25 }
 0x33b   : > { %4034 = vst [vmem:[#allocation11_spill] sm:$0xff] %v3678_v57  ;;  %v3687_v23 = vsel %vm1343_vm2, %v3678_v57, -1e+30 }
 0x33c   : > { %1340 = vst [vmem:[%s3219_s29 + $0xf8] sm:$0xff] %v3678_v57  ;;  %v2772_v12 = vpop.eup %2771  ;;  %1438 = vmax.xlane.f32.xlu1 %v3687_v23  ;;  %2773 = vpow2.f32 %v1504_v0 }
 0x33d   : > { %1566 = vadd.xlane.f32.xlu2 %v2772_v12  ;;  %1436 = vmax.xlane.f32.xlu0 %v3693_v10  ;;  %2775 = vlog2.f32 %v1537_v1  ;;  %v3710_v1 = vstv %s2645_s21 }
 0x33f   : > { %v3698_v54 = vpop.xlane.xlu2 %1410 }
 0x340   : > { %4036 = vst [vmem:[#allocation13_spill] sm:$0xff] %v3698_v54  ;;  %v1457_v56 = vsub.f32 %v3456_v7, %v3698_v54  ;;  %v2019_v54 = vadd.s32 16, %v3708_v25 }
 0x341   : > { %v3703_v37 = vpop.xlane.xlu0 %1984 }
 0x342   : > { %4038 = vst [vmem:[#allocation14_spill] sm:$0xff] %v3703_v37  ;;  %v1506_v43 = vmul.f32 1.442695, %v1457_v56  ;;  %v2774_v12 = vpop.eup %2773  ;;  %v2018_v56 = vadd.s32 8, %v3708_v25  ;;  %v2053_v44 = vadd.s32 %v3710_v1, %v2019_v54 }
 0x343   : > { %v2776_v24 = vpop.eup %2775 }
 0x344   : > { %2777 = vpow2.f32 %v1506_v43  ;;  %2002 = vadd.xlane.f32.xlu1 %v1945_v15  ;;  %v1601_v7 = vmul.f32 0.6931472, %v2776_v24  ;;  %v2051_v43 = vadd.s32 %v3710_v1, %v3708_v25  ;;  %vm2085_vm0 = vcmp.lt.s32.totalorder %v2053_v44, 512 }
 0x345   : > { %1568 = vadd.xlane.f32.xlu0 %v2774_v12  ;;  %v2052_v12 = vadd.s32 %v3710_v1, %v2018_v56  ;;  %v2054_v56 = vadd.s32 %v3710_v1, %v2020_v28 }
 0x346   : > { %v1541_v0 = vpop.xlane.xlu1 %1540  ;;  %v1664_v53 = vadd.f32 %v1601_v7, %v3411_v48  ;;  %vm2083_vm2 = vcmp.lt.s32.totalorder %v2051_v43, 512 }
 0x347   : > { %2779 = vlog2.f32 %v1541_v0  ;;  %vm2084_vm1 = vcmp.lt.s32.totalorder %v2052_v12, 512  ;;  %v2646_v54 = vsel %vm2083_vm2, 1.0, %v4037_v63  ;;  %vm2086_vm4 = vcmp.lt.s32.totalorder %v2054_v56, 512 }
 0x348   : > { %v2647_v43 = vsel %vm2084_vm1, 1.0, %v4037_v63 }
 0x349   : > { %v1539_v37 = vpop.xlane.xlu0 %1538 }
 0x34a   : > { %v2778_v35 = vpop.eup %2777  ;;  %2781 = vlog2.f32 %v1539_v37 }
 0x34c   : > { %1570 = vadd.xlane.f32.xlu1 %v2778_v35  ;;  %v2179_v35 = vsub.f32 %v1664_v53, %v3427_v61 }
 0x34d   : > { %v2780_v15 = vpop.eup %2779 }
 0x34e   : > { %v1605_v0 = vmul.f32 0.6931472, %v2780_v15  ;;  %v3719_v24 = vpop.xlane.xlu1 %1988  ;;  %v1543_v57 = vpop.xlane.xlu2 %1542 }
 0x34f   : > { %4040 = vst [vmem:[#allocation15_spill] sm:$0xff] %v3719_v24  ;;  %2783 = vlog2.f32 %v1543_v57  ;;  %v2648_v57 = vsel %vm2085_vm0, 1.0, %v4037_v63 }
 0x350   : > { %v2782_v37 = vpop.eup %2781  ;;  %v1666_v51 = vadd.f32 %v1605_v0, %v3445_v18  ;;  %v2211_v0 = vmul.f32 %v2646_v54, %v2179_v35 }
 0x351   : > { %v1603_v48 = vmul.f32 0.6931472, %v2782_v37  ;;  %v3724_v7 = vpop.xlane.xlu0 %1986 }
 0x352   : > { %v2181_v15 = vsub.f32 %v1666_v51, %v3459_v17  ;;  %v2244_v35 = vsel %vm2243_vm3, %v2211_v0, 0.0 }
 0x353   : > { %v1665_v24 = vadd.f32 %v1603_v48, %v3429_v3 }
 0x354   : > { %v2213_v12 = vmul.f32 %v2648_v57, %v2181_v15 }
 0x355   : > { %v2784_v18 = vpop.eup %2783  ;;  %v2180_v61 = vsub.f32 %v1665_v24, %v3451_v31  ;;  %v2649_v24 = vsel %vm2086_vm4, 1.0, %v4037_v63 }
 0x356   : > { %v1607_v53 = vmul.f32 0.6931472, %v2784_v18  ;;  %v3733_v44 = vpop.xlane.xlu1 %1414 }
 0x357   : > { %v2212_v37 = vmul.f32 %v2647_v43, %v2180_v61  ;;  %v1459_v51 = vsub.f32 %v3486_v21, %v3733_v44  ;;  %v3737_v28 = vpop.xlane.xlu2 %1416 }
 0x358   : > { %v1667_v3 = vadd.f32 %v1607_v53, %v3461_v33  ;;  %v1460_v17 = vsub.f32 %v3494_v26, %v3737_v28  ;;  %v2247_v33 = vsel %vm2243_vm3, %v2213_v12, 0.0 }
 0x359   : > { %v2245_v31 = vsel %vm2243_vm3, %v2212_v37, 0.0  ;;  %v1510_v48 = vmul.f32 1.442695, %v1459_v51  ;;  %v3745_v54 = vpop.xlane.xlu0 %1412 }
 0x35a   : > { %v2246_v56 = vadd.f32 %v2245_v31, %v2244_v35  ;;  %v2182_v15 = vsub.f32 %v1667_v3, %v3469_v55  ;;  %v1512_v21 = vmul.f32 1.442695, %v1460_v17  ;;  %v1458_v57 = vsub.f32 %v3499_v27, %v3745_v54 }
 0x35b   : > { %2785 = vpow2.f32 %v1510_v48  ;;  %v2022_v17 = vadd.s32 40, %v3708_v25  ;;  %v2021_v35 = vadd.s32 32, %v3708_v25 }
 0x35c   : > { %v2214_v26 = vmul.f32 %v2649_v24, %v2182_v15  ;;  %v2248_v43 = vadd.f32 %v2247_v33, %v2246_v56  ;;  %2787 = vpow2.f32 %v1512_v21  ;;  %v1508_v18 = vmul.f32 1.442695, %v1458_v57 }
 0x35d   : > { %v2023_v24 = vadd.s32 48, %v3708_v25  ;;  %v2056_v48 = vadd.s32 %v3710_v1, %v2022_v17  ;;  %v2055_v15 = vadd.s32 %v3710_v1, %v2021_v35 }
 0x35e   : > { %v2249_v0 = vsel %vm2243_vm3, %v2214_v26, 0.0  ;;  %2789 = vpow2.f32 %v1508_v18  ;;  %v3752_v61 = vpop.xlane.xlu1 %1992 }
 0x35f   : > { %v2250_v53 = vadd.f32 %v2249_v0, %v2248_v43  ;;  %v2057_v26 = vadd.s32 %v3710_v1, %v2023_v24  ;;  %vm2088_vm5 = vcmp.lt.s32.totalorder %v2056_v48, 512  ;;  %vm2087_vm6 = vcmp.lt.s32.totalorder %v2055_v15, 512 }
 0x361   : > { %v2786_v37 = vpop.eup %2785  ;;  %v3754_v51 = vpop.xlane.xlu0 %1990  ;;  %vm2089_vm7 = vcmp.lt.s32.totalorder %v2057_v26, 512 }
 0x362   : > { %v2788_v55 = vpop.eup %2787  ;;  %1574 = vadd.xlane.f32.xlu0 %v2786_v37 }
 0x363   : > { %1576 = vadd.xlane.f32.xlu1 %v2788_v55 }
 0x364   : > { %v2790_v27 = vpop.eup %2789 }
 0x365   : > { %1572 = vadd.xlane.f32.xlu2 %v2790_v27 }
 0x366   : > { %v1547_v12 = vpop.xlane.xlu1 %1546  ;;  %v1549_v3 = vpop.xlane.xlu2 %1548 }
 0x367   : > { %2791 = vlog2.f32 %v1547_v12 }
 0x368   : > { %2793 = vlog2.f32 %v1549_v3 }
 0x369   : > { %v1545_v31 = vpop.xlane.xlu0 %1544 }
 0x36a   : > { %2795 = vlog2.f32 %v1545_v31 }
 0x36d   : > { %v2792_v56 = vpop.eup %2791 }
 0x36e   : > { %v2794_v21 = vpop.eup %2793  ;;  %v1611_v57 = vmul.f32 0.6931472, %v2792_v56  ;;  %v3761_v33 = vpop.xlane.xlu1 %1420 }
 0x36f   : > { %v1613_v43 = vmul.f32 0.6931472, %v2794_v21  ;;  %v1462_v18 = vsub.f32 %v3533_v29, %v3761_v33  ;;  %v3766_v0 = vpop.xlane.xlu2 %1422  ;;  %v2652_v21 = vsel %vm2089_vm7, 1.0, %v4037_v63 }
 0x370   : > { %v2796_v37 = vpop.eup %2795  ;;  %v1669_v55 = vadd.f32 %v1611_v57, %v3481_v40  ;;  %v1463_v27 = vsub.f32 %v3539_v19, %v3766_v0  ;;  %v2651_v40 = vsel %vm2088_vm5, 1.0, %v4037_v63  ;;  %v2650_v19 = vsel %vm2087_vm6, 1.0, %v4037_v63 }
 0x371   : > { %v1670_v12 = vadd.f32 %v1613_v43, %v3508_v30  ;;  %v1609_v3 = vmul.f32 0.6931472, %v2796_v37  ;;  %v1516_v17 = vmul.f32 1.442695, %v1462_v18  ;;  %v3772_v35 = vpop.xlane.xlu0 %1418 }
 0x372   : > { %v1518_v31 = vmul.f32 1.442695, %v1463_v27  ;;  %v1461_v29 = vsub.f32 %v3546_v39, %v3772_v35  ;;  %v2184_v24 = vsub.f32 %v1669_v55, %v3521_v6 }
 0x373   : > { %v1668_v48 = vadd.f32 %v1609_v3, %v3473_v20  ;;  %2797 = vpow2.f32 %v1516_v17  ;;  %v2185_v56 = vsub.f32 %v1670_v12, %v3516_v52 }
 0x374   : > { %2799 = vpow2.f32 %v1518_v31  ;;  %v1514_v30 = vmul.f32 1.442695, %v1461_v29  ;;  %v2216_v6 = vmul.f32 %v2651_v40, %v2184_v24  ;;  %v2025_v29 = vadd.s32 64, %v3708_v25 }
 0x375   : > { %v2183_v15 = vsub.f32 %v1668_v48, %v3479_v8  ;;  %v2217_v43 = vmul.f32 %v2652_v21, %v2185_v56  ;;  %v2024_v48 = vadd.s32 56, %v3708_v25 }
 0x376   : > { %2801 = vpow2.f32 %v1514_v30  ;;  %v3783_v39 = vpop.xlane.xlu1 %1996  ;;  %v2253_v8 = vsel %vm2243_vm3, %v2216_v6, 0.0 }
 0x377   : > { %v2215_v57 = vmul.f32 %v2650_v19, %v2183_v15  ;;  %v3785_v26 = vpop.xlane.xlu2 %1998  ;;  %v2255_v3 = vsel %vm2243_vm3, %v2217_v43, 0.0  ;;  %v2059_v19 = vadd.s32 %v3710_v1, %v2025_v29  ;;  %v2058_v56 = vadd.s32 %v3710_v1, %v2024_v48 }
 0x379   : > { %v2798_v20 = vpop.eup %2797  ;;  %v2251_v18 = vsel %vm2243_vm3, %v2215_v57, 0.0  ;;  %v3788_v37 = vpop.xlane.xlu0 %1994  ;;  %vm2091_vm8 = vcmp.lt.s32.totalorder %v2059_v19, 512  ;;  %vm2090_vm9 = vcmp.lt.s32.totalorder %v2058_v56, 512 }
 0x37a   : > { %v2800_v55 = vpop.eup %2799  ;;  %v2252_v27 = vadd.f32 %v2251_v18, %v2250_v53  ;;  %1580 = vadd.xlane.f32.xlu0 %v2798_v20  ;;  %v2026_v53 = vadd.s32 72, %v3708_v25  ;;  %v2654_v48 = vsel %vm2091_vm8, 1.0, %v4037_v63 }
 0x37b   : > { %1582 = vadd.xlane.f32.xlu1 %v2800_v55 }
 0x37c   : > { %v2802_v52 = vpop.eup %2801  ;;  %v2254_v12 = vadd.f32 %v2253_v8, %v2252_v27  ;;  %v2060_v21 = vadd.s32 %v3710_v1, %v2026_v53 }
 0x37d   : > { %1578 = vadd.xlane.f32.xlu2 %v2802_v52 }
 0x37e   : > { %v1553_v17 = vpop.xlane.xlu1 %1552  ;;  %v2256_v31 = vadd.f32 %v2255_v3, %v2254_v12  ;;  %vm2092_vm10 = vcmp.lt.s32.totalorder %v2060_v21, 512 }
 0x37f   : > { %2803 = vlog2.f32 %v1553_v17 }
 0x380   : > { %v1555_v24 = vpop.xlane.xlu2 %1554 }
 0x381   : > { %2805 = vlog2.f32 %v1555_v24  ;;  %v1551_v40 = vpop.xlane.xlu0 %1550 }
 0x382   : > { %2807 = vlog2.f32 %v1551_v40  ;;  %v2653_v40 = vsel %vm2090_vm9, 1.0, %v4037_v63 }
 0x385   : > { %v2804_v30 = vpop.eup %2803 }
 0x386   : > { %v1617_v15 = vmul.f32 0.6931472, %v2804_v30  ;;  %v3798_v6 = vpop.xlane.xlu1 %1426 }
 0x387   : > { %v2806_v57 = vpop.eup %2805  ;;  %v1465_v20 = vsub.f32 %v3587_v60, %v3798_v6 }
 0x388   : > { %v2808_v43 = vpop.eup %2807  ;;  %v1672_v18 = vadd.f32 %v1617_v15, %v3525_v42  ;;  %v1619_v55 = vmul.f32 0.6931472, %v2806_v57  ;;  %v3803_v27 = vpop.xlane.xlu2 %1428 }
 0x389   : > { %v1615_v8 = vmul.f32 0.6931472, %v2808_v43  ;;  %v1522_v52 = vmul.f32 1.442695, %v1465_v20  ;;  %v1466_v12 = vsub.f32 %v3595_v5, %v3803_v27  ;;  %v3807_v3 = vpop.xlane.xlu0 %1424 }
 0x38a   : > { %v1673_v17 = vadd.f32 %v1619_v55, %v3560_v58  ;;  %v1464_v60 = vsub.f32 %v3599_v9, %v3807_v3  ;;  %v2187_v29 = vsub.f32 %v1672_v18, %v3527_v22  ;;  %v2655_v58 = vsel %vm2092_vm10, 1.0, %v4037_v63 }
 0x38b   : > { %v1671_v42 = vadd.f32 %v1615_v8, %v3529_v49  ;;  %2809 = vpow2.f32 %v1522_v52  ;;  %v1524_v24 = vmul.f32 1.442695, %v1466_v12 }
 0x38c   : > { %v1520_v5 = vmul.f32 1.442695, %v1464_v60  ;;  %v2188_v53 = vsub.f32 %v1673_v17, %v3569_v2  ;;  %v2219_v22 = vmul.f32 %v2654_v48, %v2187_v29  ;;  %v2027_v60 = vadd.s32 80, %v3708_v25 }
 0x38d   : > { %v2186_v30 = vsub.f32 %v1671_v42, %v3518_v62  ;;  %2811 = vpow2.f32 %v1524_v24  ;;  %v2029_v48 = vadd.s32 96, %v3708_v25 }
 0x38e   : > { %2813 = vpow2.f32 %v1520_v5  ;;  %v1559_v9 = vpop.xlane.xlu1 %1558  ;;  %v2220_v15 = vmul.f32 %v2655_v58, %v2188_v53  ;;  %v2259_v2 = vsel %vm2243_vm3, %v2219_v22, 0.0  ;;  %v2061_v5 = vadd.s32 %v3710_v1, %v2027_v60 }
 0x38f   : > { %v2218_v56 = vmul.f32 %v2653_v40, %v2186_v30  ;;  %2815 = vlog2.f32 %v1559_v9  ;;  %v2063_v30 = vadd.s32 %v3710_v1, %v2029_v48  ;;  %v2031_v60 = vadd.s32 112, %v3708_v25 }
 0x390   : > { %v2261_v18 = vsel %vm2243_vm3, %v2220_v15, 0.0  ;;  %vm2093_vm12 = vcmp.lt.s32.totalorder %v2061_v5, 512 }
 0x391   : > { %v2810_v49 = vpop.eup %2809  ;;  %v2257_v21 = vsel %vm2243_vm3, %v2218_v56, 0.0  ;;  %v3821_v19 = vpop.xlane.xlu0 %2000  ;;  %vm2095_vm13 = vcmp.lt.s32.totalorder %v2063_v30, 512 }
 0x392   : > { %v2258_v57 = vadd.f32 %v2257_v21, %v2256_v31  ;;  %1586 = vadd.xlane.f32.xlu0 %v2810_v49  ;;  %v2028_v31 = vadd.s32 88, %v3708_v25 }
 0x393   : > { %v2812_v20 = vpop.eup %2811 }
 0x394   : > { %v2814_v62 = vpop.eup %2813  ;;  %v2260_v43 = vadd.f32 %v2259_v2, %v2258_v57  ;;  %1588 = vadd.xlane.f32.xlu1 %v2812_v20  ;;  %v2062_v40 = vadd.s32 %v3710_v1, %v2028_v31 }
 0x395   : > { %1584 = vadd.xlane.f32.xlu2 %v2814_v62  ;;  %v2816_v52 = vpop.eup %2815 }
 0x396   : > { %v2262_v55 = vadd.f32 %v2261_v18, %v2260_v43  ;;  %v1623_v24 = vmul.f32 0.6931472, %v2816_v52  ;;  %vm2094_vm11 = vcmp.lt.s32.totalorder %v2062_v40, 512  ;;  %v2656_v18 = vsel %vm2093_vm12, 1.0, %v4037_v63 }
 0x397   : > { %v3825_v8 = vpop.xlane.xlu1 %1432  ;;  %v2657_v43 = vsel %vm2094_vm11, 1.0, %v4037_v63 }
 0x398   : > { %v1468_v12 = vsub.f32 %v3632_v46, %v3825_v8  ;;  %v1561_v17 = vpop.xlane.xlu2 %1560  ;;  %v1675_v46 = vadd.f32 %v1623_v24, %v3573_v41 }
 0x399   : > { %2817 = vlog2.f32 %v1561_v17  ;;  %v1557_v29 = vpop.xlane.xlu0 %1556 }
 0x39a   : > { %v1528_v42 = vmul.f32 1.442695, %v1468_v12  ;;  %2819 = vlog2.f32 %v1557_v29  ;;  %v2190_v20 = vsub.f32 %v1675_v46, %v3582_v34  ;;  %v2030_v29 = vadd.s32 104, %v3708_v25 }
 0x39b   : > { %v2065_v46 = vadd.s32 %v3710_v1, %v2031_v60  ;;  %v4044_v60 = vld [vmem:[#allocation6_spill] sm:$0xff] }
 0x39c   : > { %2821 = vpow2.f32 %v1528_v42  ;;  %v2222_v34 = vmul.f32 %v2657_v43, %v2190_v20  ;;  %v2064_v30 = vadd.s32 %v3710_v1, %v2030_v29  ;;  %v4045_v29 = vld [vmem:[#allocation5_spill] sm:$0xff] }
 0x39d   : > { %vm2097_vm14 = vcmp.lt.s32.totalorder %v2065_v46, 512 }
 0x39e   : > { %vm2096_vm15 = vcmp.lt.s32.totalorder %v2064_v30, 512 }
 0x39f   : > { %v2818_v53 = vpop.eup %2817 }
 0x3a0   : > { %v2820_v58 = vpop.eup %2819  ;;  %v1625_v9 = vmul.f32 0.6931472, %v2818_v53  ;;  %v3836_v22 = vpop.xlane.xlu2 %1434 }
 0x3a1   : > { %v1621_v56 = vmul.f32 0.6931472, %v2820_v58  ;;  %v1469_v49 = vsub.f32 %v3652_v32, %v3836_v22  ;;  %v3840_v15 = vpop.xlane.xlu0 %1430 }
 0x3a2   : > { %v2822_v21 = vpop.eup %2821  ;;  %v1676_v57 = vadd.f32 %v1625_v9, %v3610_v59  ;;  %v1467_v41 = vsub.f32 %v3658_v36, %v3840_v15  ;;  %v2658_v59 = vsel %vm2095_vm13, 1.0, %v4037_v63 }
 0x3a3   : > { %v1674_v2 = vadd.f32 %v1621_v56, %v3577_v50  ;;  %v1530_v62 = vmul.f32 1.442695, %v1469_v49  ;;  %1592 = vadd.xlane.f32.xlu0 %v2822_v21 }
 0x3a4   : > { %v1526_v32 = vmul.f32 1.442695, %v1467_v41  ;;  %v2191_v52 = vsub.f32 %v1676_v57, %v3624_v47 }
 0x3a5   : > { %v2189_v12 = vsub.f32 %v1674_v2, %v3616_v45  ;;  %2823 = vpow2.f32 %v1530_v62  ;;  %v2265_v45 = vsel %vm2243_vm3, %v2222_v34, 0.0  ;;  %v4042_v34 = vld [vmem:[#allocation11_spill] sm:$0xff] }
 0x3a6   : > { %2825 = vpow2.f32 %v1526_v32  ;;  %v1565_v36 = vpop.xlane.xlu1 %1564  ;;  %v2223_v50 = vmul.f32 %v2658_v59, %v2191_v52  ;;  %v4041_v52 = vld [vmem:[#allocation2_spill] sm:$0xff] }
 0x3a7   : > { %v2221_v17 = vmul.f32 %v2656_v18, %v2189_v12  ;;  %2827 = vlog2.f32 %v1565_v36  ;;  %v2660_v18 = vsel %vm2097_vm14, 1.0, %v4037_v63  ;;  %vm1855_vm2 = vcmp.eq.s32.totalorder %v4041_v52, %v3443_v16  ;;  %v4043_v16 = vld [vmem:[#allocation3_spill] sm:$0xff] }
 0x3a8   : > { %v2267_v53 = vsel %vm2243_vm3, %v2223_v50, 0.0  ;;  %vm1850_vm0 = vcmp.eq.s32.totalorder %v4041_v52, %v4043_v16  ;;  %v4052_v16 = vld [vmem:[#allocation13_spill] sm:$0xff] }
 0x3a9   : > { %v2263_v31 = vsel %vm2243_vm3, %v2221_v17, 0.0  ;;  %v1563_v42 = vpop.xlane.xlu0 %1562 }
 0x3aa   : > { %v2264_v24 = vadd.f32 %v2263_v31, %v2262_v55  ;;  %2829 = vlog2.f32 %v1563_v42 }
 0x3ab   : > { %v2824_v47 = vpop.eup %2823 }
 0x3ac   : > { %v2826_v48 = vpop.eup %2825  ;;  %v2266_v40 = vadd.f32 %v2265_v45, %v2264_v24  ;;  %1594 = vadd.xlane.f32.xlu1 %v2824_v47  ;;  %v4046_v24 = vld [vmem:[#allocation4_spill] sm:$0xff] }
 0x3ad   : > { %v2828_v5 = vpop.eup %2827  ;;  %1590 = vadd.xlane.f32.xlu2 %v2826_v48  ;;  %vm1854_vm1 = vcmp.eq.s32.totalorder %v4041_v52, %v4046_v24  ;;  %v4047_v45 = vld [vmem:[#allocation8_spill] sm:$0xff]  ;;  %v2036_v24 = vadd.s32 152, %v3708_v25 }
 0x3ae   : > { %v1629_v58 = vmul.f32 0.6931472, %v2828_v5  ;;  %v2268_v9 = vadd.f32 %v2267_v53, %v2266_v40  ;;  %v2643_v47 = vsel %vm1854_vm1, 1.0, %v4037_v63  ;;  %v4048_v40 = vld [vmem:[#allocation7_spill] sm:$0xff] }
 0x3af   : > { %v3859_v56 = vpop.xlane.xlu1 %1438  ;;  %v1950_v48 = vmul.f32 %v2643_v47, %v4047_v45  ;;  %v4053_v47 = vld [vmem:[#allocation14_spill] sm:$0xff] }
 0x3b0   : > { %v2830_v55 = vpop.eup %2829  ;;  %v1678_v49 = vadd.f32 %v1629_v58, %v3641_v11  ;;  %v1471_v21 = vsub.f32 %v3687_v23, %v3859_v56  ;;  %v2659_v11 = vsel %vm2096_vm15, 1.0, %v4037_v63  ;;  %v1567_v53 = vpop.xlane.xlu2 %1566 }
 0x3b1   : > { %v1627_v57 = vmul.f32 0.6931472, %v2830_v55  ;;  %v3864_v41 = vpop.xlane.xlu0 %1436  ;;  %v2032_v55 = vadd.s32 120, %v3708_v25 }
 0x3b2   : > { %v1534_v20 = vmul.f32 1.442695, %v1471_v21  ;;  %v1470_v2 = vsub.f32 %v3693_v10, %v3864_v41  ;;  %v2193_v62 = vsub.f32 %v1678_v49, %v3662_v14  ;;  %v2644_v14 = vsel %vm1855_vm2, 1.0, %v4037_v63 }
 0x3b3   : > { %v1677_v43 = vadd.f32 %v1627_v57, %v3627_v38  ;;  %v1951_v17 = vmul.f32 %v2644_v14, %v4042_v34  ;;  %v2033_v21 = vadd.s32 128, %v3708_v25  ;;  %v2035_v14 = vadd.s32 144, %v3708_v25 }
 0x3b4   : > { %2831 = vpow2.f32 %v1534_v20  ;;  %v1532_v32 = vmul.f32 1.442695, %v1470_v2  ;;  %2008 = vadd.xlane.f32.xlu1 %v3634_v4  ;;  %v2225_v12 = vmul.f32 %v2660_v18, %v2193_v62  ;;  %v2066_v62 = vadd.s32 %v3710_v1, %v2032_v55 }
 0x3b5   : > { %v2192_v23 = vsub.f32 %v1677_v43, %v3646_v13  ;;  %v2639_v13 = vsel %vm1850_vm0, 1.0, %v4037_v63  ;;  %v2034_v18 = vadd.s32 136, %v3708_v25 }
 0x3b6   : > { %2833 = vpow2.f32 %v1532_v32  ;;  %v2271_v50 = vsel %vm2243_vm3, %v2225_v12, 0.0  ;;  %v1946_v42 = vmul.f32 %v2639_v13, %v4045_v29  ;;  %v2067_v32 = vadd.s32 %v3710_v1, %v2033_v21 }
 0x3b7   : > { %v2224_v10 = vmul.f32 %v2659_v11, %v2192_v23  ;;  %v3892_v5 = vpop.xlane.xlu1 %2002  ;;  %2835 = vlog2.f32 %v1567_v53  ;;  %v4049_v23 = vld [vmem:[#allocation9_spill] sm:$0xff]  ;;  %vm2098_vm4 = vcmp.lt.s32.totalorder %v2066_v62, 512  ;;  %v2068_v34 = vadd.s32 %v3710_v1, %v2034_v18 }
 0x3b8   : > { %vm2099_vm5 = vcmp.lt.s32.totalorder %v2067_v32, 512  ;;  %v2038_v18 = vadd.s32 168, %v3708_v25 }
 0x3b9   : > { %v2269_v38 = vsel %vm2243_vm3, %v2224_v10, 0.0  ;;  %v1569_v46 = vpop.xlane.xlu0 %1568  ;;  %vm2100_vm6 = vcmp.lt.s32.totalorder %v2068_v34, 512  ;;  %v2662_v53 = vsel %vm2099_vm5, 1.0, %v4037_v63 }
 0x3ba   : > { %v2832_v59 = vpop.eup %2831  ;;  %v2270_v36 = vadd.f32 %v2269_v38, %v2268_v9  ;;  %2837 = vlog2.f32 %v1569_v46  ;;  %v2663_v55 = vsel %vm2100_vm6, 1.0, %v4037_v63  ;;  %v2072_v34 = vadd.s32 %v3710_v1, %v2038_v18 }
 0x3bb   : > { %1598 = vadd.xlane.f32.xlu0 %v2832_v59  ;;  %v4050_v59 = vld [vmem:[#allocation10_spill] sm:$0xff]  ;;  %v2042_v18 = vadd.s32 200, %v3708_v25 }
 0x3bc   : > { %v2834_v4 = vpop.eup %2833  ;;  %v3880_v31 = vadd.f32 %v2271_v50, %v2270_v36  ;;  %2014 = vadd.xlane.f32.xlu1 %v1951_v17  ;;  %v4051_v50 = vld [vmem:[#allocation12_spill] sm:$0xff]  ;;  %vm2104_vm10 = vcmp.lt.s32.totalorder %v2072_v34, 512 }
 0x3bd   : > { %1596 = vadd.xlane.f32.xlu2 %v2834_v4  ;;  %v2836_v9 = vpop.eup %2835 }
 0x3be   : > { %v1631_v57 = vmul.f32 0.6931472, %v2836_v9 }
 0x3bf   : > { %v1571_v30 = vpop.xlane.xlu1 %1570 }
 0x3c0   : > { %2839 = vlog2.f32 %v1571_v30  ;;  %v2838_v49 = vpop.eup %2837  ;;  %v1679_v52 = vadd.f32 %v1631_v57, %v4049_v23 }
 0x3c1   : > { %v1633_v43 = vmul.f32 0.6931472, %v2838_v49  ;;  %v2070_v49 = vadd.s32 %v3710_v1, %v2036_v24 }
 0x3c2   : > { %v2194_v4 = vsub.f32 %v1679_v52, %v4051_v50 }
 0x3c3   : > { %2006 = vadd.xlane.f32.xlu0 %v4044_v60  ;;  %v1680_v36 = vadd.f32 %v1633_v43, %v4050_v59  ;;  %v2069_v60 = vadd.s32 %v3710_v1, %v2035_v14  ;;  %vm2102_vm8 = vcmp.lt.s32.totalorder %v2070_v49, 512 }
 0x3c5   : > { %2004 = vadd.xlane.f32.xlu2 %v1946_v42  ;;  %v2661_v42 = vsel %vm2098_vm4, 1.0, %v4037_v63  ;;  %v2195_v45 = vsub.f32 %v1680_v36, %v4053_v47  ;;  %vm2101_vm7 = vcmp.lt.s32.totalorder %v2069_v60, 512  ;;  %v2665_v60 = vsel %vm2102_vm8, 1.0, %v4037_v63 }
 0x3c6   : > { %v2840_v2 = vpop.eup %2839  ;;  %v2226_v46 = vmul.f32 %v2661_v42, %v2194_v4  ;;  %v2664_v43 = vsel %vm2101_vm7, 1.0, %v4037_v63  ;;  %v2039_v4 = vadd.s32 176, %v3708_v25 }
 0x3c7   : > { %v1635_v12 = vmul.f32 0.6931472, %v2840_v2  ;;  %v2227_v57 = vmul.f32 %v2662_v53, %v2195_v45  ;;  %v4054_v2 = vld [vmem:[#allocation15_spill] sm:$0xff] }
 0x3c9   : > { %v1681_v13 = vadd.f32 %v1635_v12, %v4052_v16 }
 0x3cb   : > { %2012 = vadd.xlane.f32.xlu0 %v1950_v48  ;;  %v2196_v30 = vsub.f32 %v1681_v13, %v3724_v7 }
 0x3cd   : > { %2010 = vadd.xlane.f32.xlu2 %v4048_v40  ;;  %v2228_v32 = vmul.f32 %v2663_v55, %v2196_v30  ;;  %v2041_v30 = vadd.s32 192, %v3708_v25  ;;  %v2667_v55 = vsel %vm2104_vm10, 1.0, %v4037_v63 }
 0x3d5   : > { %v1575_v20 = vpop.xlane.xlu0 %1574 }
 0x3d6   : > { %v1577_v10 = vpop.xlane.xlu1 %1576 }
 0x3d8   : > { %v1573_v58 = vpop.xlane.xlu2 %1572 }
 0x3d9   : > { %2841 = vlog2.f32 %v1573_v58 }
 0x3da   : > { %2843 = vlog2.f32 %v1575_v20  ;;  %v2037_v20 = vadd.s32 160, %v3708_v25 }
 0x3db   : > { %2845 = vlog2.f32 %v1577_v10  ;;  %v2275_v10 = vsel %vm2243_vm3, %v2227_v57, 0.0 }
 0x3dc   : > { %v2071_v14 = vadd.s32 %v3710_v1, %v2037_v20 }
 0x3de   : > { %vm2103_vm9 = vcmp.lt.s32.totalorder %v2071_v14, 512 }
 0x3df   : > { %v2842_v11 = vpop.eup %2841  ;;  %v2666_v53 = vsel %vm2103_vm9, 1.0, %v4037_v63 }
 0x3e0   : > { %v1637_v17 = vmul.f32 0.6931472, %v2842_v11  ;;  %v2844_v29 = vpop.eup %2843  ;;  %v2273_v11 = vsel %vm2243_vm3, %v2226_v46, 0.0 }
 0x3e1   : > { %v1639_v58 = vmul.f32 0.6931472, %v2844_v29  ;;  %v2846_v9 = vpop.eup %2845  ;;  %v2274_v36 = vadd.f32 %v2273_v11, %v3880_v31 }
 0x3e2   : > { %v1682_v48 = vadd.f32 %v1637_v17, %v3745_v54  ;;  %v1641_v52 = vmul.f32 0.6931472, %v2846_v9  ;;  %v2277_v17 = vsel %vm2243_vm3, %v2228_v32, 0.0 }
 0x3e3   : > { %v1683_v23 = vadd.f32 %v1639_v58, %v3733_v44  ;;  %v2276_v13 = vadd.f32 %v2275_v10, %v2274_v36  ;;  %v2044_v36 = vadd.s32 216, %v3708_v25 }
 0x3e4   : > { %v2197_v54 = vsub.f32 %v1682_v48, %v4054_v2  ;;  %v1684_v44 = vadd.f32 %v1641_v52, %v3737_v28  ;;  %v2073_v48 = vadd.s32 %v3710_v1, %v2039_v4 }
 0x3e5   : > { %v2198_v50 = vsub.f32 %v1683_v23, %v3754_v51  ;;  %v2278_v47 = vadd.f32 %v2277_v17, %v2276_v13  ;;  %v2043_v17 = vadd.s32 208, %v3708_v25 }
 0x3e6   : > { %v2199_v28 = vsub.f32 %v1684_v44, %v3752_v61  ;;  %vm2105_vm11 = vcmp.lt.s32.totalorder %v2073_v48, 512 }
 0x3e7   : > { %v2230_v45 = vmul.f32 %v2665_v60, %v2198_v50  ;;  %v2668_v32 = vsel %vm2105_vm11, 1.0, %v4037_v63 }
 0x3e8   : > { %v2231_v20 = vmul.f32 %v2666_v53, %v2199_v28 }
 0x3e9   : > { %v2281_v61 = vsel %vm2243_vm3, %v2230_v45, 0.0 }
 0x3ea   : > { %v2283_v52 = vsel %vm2243_vm3, %v2231_v20, 0.0  ;;  %v2048_v20 = vadd.s32 248, %v3708_v25 }
 0x3ed   : > { %v1581_v40 = vpop.xlane.xlu0 %1580 }
 0x3ee   : > { %v1583_v62 = vpop.xlane.xlu1 %1582 }
 0x3f0   : > { %v1579_v38 = vpop.xlane.xlu2 %1578 }
 0x3f1   : > { %2847 = vlog2.f32 %v1579_v38  ;;  %v2229_v38 = vmul.f32 %v2664_v43, %v2197_v54 }
 0x3f2   : > { %2849 = vlog2.f32 %v1581_v40  ;;  %v2040_v40 = vadd.s32 184, %v3708_v25 }
 0x3f3   : > { %2851 = vlog2.f32 %v1583_v62  ;;  %v2279_v31 = vsel %vm2243_vm3, %v2229_v38, 0.0  ;;  %v2076_v38 = vadd.s32 %v3710_v1, %v2042_v18 }
 0x3f4   : > { %v2280_v46 = vadd.f32 %v2279_v31, %v2278_v47  ;;  %v2074_v2 = vadd.s32 %v3710_v1, %v2040_v40 }
 0x3f5   : > { %vm2108_vm14 = vcmp.lt.s32.totalorder %v2076_v38, 512 }
 0x3f6   : > { %v2282_v43 = vadd.f32 %v2281_v61, %v2280_v46  ;;  %vm2106_vm12 = vcmp.lt.s32.totalorder %v2074_v2, 512  ;;  %v2671_v48 = vsel %vm2108_vm14, 1.0, %v4037_v63 }
 0x3f7   : > { %v2848_v21 = vpop.eup %2847 }
 0x3f8   : > { %v1643_v12 = vmul.f32 0.6931472, %v2848_v21  ;;  %v2850_v59 = vpop.eup %2849  ;;  %v2284_v10 = vadd.f32 %v2283_v52, %v2282_v43 }
 0x3f9   : > { %v1645_v42 = vmul.f32 0.6931472, %v2850_v59  ;;  %v2852_v24 = vpop.eup %2851 }
 0x3fa   : > { %v1685_v29 = vadd.f32 %v1643_v12, %v3772_v35  ;;  %v1647_v9 = vmul.f32 0.6931472, %v2852_v24 }
 0x3fb   : > { %v1686_v58 = vadd.f32 %v1645_v42, %v3761_v33  ;;  %v2075_v33 = vadd.s32 %v3710_v1, %v2041_v30  ;;  %v2046_v30 = vadd.s32 232, %v3708_v25 }
 0x3fc   : > { %v2200_v35 = vsub.f32 %v1685_v29, %v3788_v37  ;;  %v1687_v11 = vadd.f32 %v1647_v9, %v3766_v0 }
 0x3fd   : > { %vm2107_vm13 = vcmp.lt.s32.totalorder %v2075_v33, 512 }
 0x3fe   : > { %v2232_v37 = vmul.f32 %v2667_v55, %v2200_v35  ;;  %v2047_v35 = vadd.s32 240, %v3708_v25 }
 0x400   : > { %v2285_v14 = vsel %vm2243_vm3, %v2232_v37, 0.0 }
 0x401   : > { %v2286_v44 = vadd.f32 %v2285_v14, %v2284_v10  ;;  %v2082_v10 = vadd.s32 %v3710_v1, %v2048_v20 }
 0x403   : > { %vm2114_vm5 = vcmp.lt.s32.totalorder %v2082_v10, 512 }
 0x405   : > { %v1587_v16 = vpop.xlane.xlu0 %1586 }
 0x407   : > { %v1589_v49 = vpop.xlane.xlu1 %1588 }
 0x408   : > { %v1585_v7 = vpop.xlane.xlu2 %1584 }
 0x409   : > { %2853 = vlog2.f32 %v1585_v7  ;;  %v2201_v7 = vsub.f32 %v1686_v58, %v3783_v39  ;;  %v2202_v39 = vsub.f32 %v1687_v11, %v3785_v26  ;;  %v2045_v26 = vadd.s32 224, %v3708_v25 }
 0x40a   : > { %2855 = vlog2.f32 %v1587_v16  ;;  %v2670_v16 = vsel %vm2107_vm13, 1.0, %v4037_v63  ;;  %v2080_v11 = vadd.s32 %v3710_v1, %v2046_v30 }
 0x40b   : > { %v2233_v59 = vmul.f32 %v2668_v32, %v2201_v7  ;;  %v2079_v53 = vadd.s32 %v3710_v1, %v2045_v26  ;;  %v2081_v7 = vadd.s32 %v3710_v1, %v2047_v35 }
 0x40c   : > { %vm2112_vm4 = vcmp.lt.s32.totalorder %v2080_v11, 512 }
 0x40d   : > { %v2287_v29 = vsel %vm2243_vm3, %v2233_v59, 0.0  ;;  %vm2111_vm0 = vcmp.lt.s32.totalorder %v2079_v53, 512  ;;  %vm2113_vm1 = vcmp.lt.s32.totalorder %v2081_v7, 512 }
 0x40e   : > { %v2288_v45 = vadd.f32 %v2287_v29, %v2286_v44  ;;  %v2676_v26 = vsel %vm2113_vm1, 1.0, %v4037_v63 }
 0x40f   : > { %v2854_v51 = vpop.eup %2853 }
 0x410   : > { %v1649_v21 = vmul.f32 0.6931472, %v2854_v51  ;;  %v2856_v62 = vpop.eup %2855  ;;  %v2077_v51 = vadd.s32 %v3710_v1, %v2043_v17 }
 0x411   : > { %v1651_v12 = vmul.f32 0.6931472, %v2856_v62 }
 0x412   : > { %v1688_v23 = vadd.f32 %v1649_v21, %v3807_v3  ;;  %v2669_v3 = vsel %vm2106_vm12, 1.0, %v4037_v63  ;;  %vm2109_vm2 = vcmp.lt.s32.totalorder %v2077_v51, 512 }
 0x413   : > { %v1689_v4 = vadd.f32 %v1651_v12, %v3798_v6  ;;  %v2234_v31 = vmul.f32 %v2669_v3, %v2202_v39  ;;  %v2672_v18 = vsel %vm2109_vm2, 1.0, %v4037_v63  ;;  %v2674_v39 = vsel %vm2111_vm0, 1.0, %v4037_v63 }
 0x414   : > { %v2203_v34 = vsub.f32 %v1688_v23, %v3821_v19  ;;  %v2078_v19 = vadd.s32 %v3710_v1, %v2044_v36 }
 0x415   : > { %v2204_v28 = vsub.f32 %v1689_v4, %v3892_v5  ;;  %v2289_v46 = vsel %vm2243_vm3, %v2234_v31, 0.0 }
 0x416   : > { %v1593_v54 = vpop.xlane.xlu0 %1592  ;;  %v2235_v24 = vmul.f32 %v2670_v16, %v2203_v34  ;;  %vm2110_vm15 = vcmp.lt.s32.totalorder %v2078_v19, 512  ;;  %v2290_v61 = vadd.f32 %v2289_v46, %v2288_v45 }
 0x418   : > { %v2291_v58 = vsel %vm2243_vm3, %v2235_v24, 0.0 }
 0x41f   : > { %v1595_v0 = vpop.xlane.xlu1 %1594 }
 0x420   : > { %v1591_v57 = vpop.xlane.xlu2 %1590 }
 0x421   : > { %2857 = vlog2.f32 %v1591_v57 }
 0x422   : > { %2859 = vlog2.f32 %v1589_v49  ;;  %v2236_v49 = vmul.f32 %v2671_v48, %v2204_v28 }
 0x423   : > { %2861 = vlog2.f32 %v1593_v54  ;;  %v2673_v54 = vsel %vm2110_vm15, 1.0, %v4037_v63 }
 0x424   : > { %v2293_v12 = vsel %vm2243_vm3, %v2236_v49, 0.0 }
 0x427   : > { %v2858_v50 = vpop.eup %2857  ;;  %v2009_v21 = vpop.xlane.xlu1 %2008 }
 0x428   : > { %v2860_v60 = vpop.eup %2859  ;;  %v1655_v47 = vmul.f32 0.6931472, %v2858_v50 }
 0x429   : > { %v2862_v6 = vpop.eup %2861  ;;  %v1653_v40 = vmul.f32 0.6931472, %v2860_v60 }
 0x42a   : > { %v1657_v9 = vmul.f32 0.6931472, %v2862_v6  ;;  %v1691_v55 = vadd.f32 %v1655_v47, %v3840_v15  ;;  %v2292_v15 = vadd.f32 %v2291_v58, %v2290_v61 }
 0x42b   : > { %v1690_v43 = vadd.f32 %v1653_v40, %v3803_v27 }
 0x42c   : > { %v1692_v32 = vadd.f32 %v1657_v9, %v3825_v8 }
 0x42e   : > { %v1599_v13 = vpop.xlane.xlu0 %1598  ;;  %v2207_v27 = vsub.f32 %v1692_v32, %v2009_v21 }
 0x42f   : > { %2863 = vlog2.f32 %v1599_v13  ;;  %v2015_v16 = vpop.xlane.xlu1 %2014 }
 0x430   : > { %v1597_v42 = vpop.xlane.xlu2 %1596  ;;  %v2239_v1 = vmul.f32 %v2674_v39, %v2207_v27 }
 0x431   : > { %2865 = vlog2.f32 %v1597_v42 }
 0x432   : > { %2867 = vlog2.f32 %v1595_v0  ;;  %v2294_v0 = vadd.f32 %v2293_v12, %v2292_v15  ;;  %v2299_v42 = vsel %vm2243_vm3, %v2239_v1, 0.0 }
 0x435   : > { %v2864_v5 = vpop.eup %2863 }
 0x436   : > { %v2007_v57 = vpop.xlane.xlu0 %2006  ;;  %v1663_v23 = vmul.f32 0.6931472, %v2864_v5 }
 0x437   : > { %v2866_v2 = vpop.eup %2865  ;;  %v2206_v62 = vsub.f32 %v1691_v55, %v2007_v57 }
 0x438   : > { %v2868_v37 = vpop.eup %2867  ;;  %v2005_v33 = vpop.xlane.xlu2 %2004  ;;  %v1661_v25 = vmul.f32 0.6931472, %v2866_v2  ;;  %v1695_v36 = vadd.f32 %v1663_v23, %v3859_v56  ;;  %v2675_v56 = vsel %vm2112_vm4, 1.0, %v4037_v63 }
 0x439   : > { %v2205_v52 = vsub.f32 %v1690_v43, %v2005_v33  ;;  %v1659_v14 = vmul.f32 0.6931472, %v2868_v37  ;;  %v2238_v38 = vmul.f32 %v2673_v54, %v2206_v62 }
 0x43a   : > { %v1694_v3 = vadd.f32 %v1661_v25, %v3864_v41  ;;  %v2210_v29 = vsub.f32 %v1695_v36, %v2015_v16  ;;  %v2677_v41 = vsel %vm2114_vm5, 1.0, %v4037_v63 }
 0x43b   : > { %v2237_v59 = vmul.f32 %v2672_v18, %v2205_v52  ;;  %v2297_v50 = vsel %vm2243_vm3, %v2238_v38, 0.0  ;;  %v1693_v4 = vadd.f32 %v1659_v14, %v3836_v22 }
 0x43c   : > { %v2242_v22 = vmul.f32 %v2677_v41, %v2210_v29 }
 0x43d   : > { %v2295_v8 = vsel %vm2243_vm3, %v2237_v59, 0.0 }
 0x43e   : > { %v2296_v34 = vadd.f32 %v2295_v8, %v2294_v0  ;;  %v2013_v17 = vpop.xlane.xlu0 %2012  ;;  %v2305_v48 = vsel %vm2243_vm3, %v2242_v22, 0.0 }
 0x43f   : > { %v2209_v44 = vsub.f32 %v1694_v3, %v2013_v17 }
 0x440   : > { %v2298_v13 = vadd.f32 %v2297_v50, %v2296_v34  ;;  %v2011_v60 = vpop.xlane.xlu2 %2010 }
 0x441   : > { %v2208_v31 = vsub.f32 %v1693_v4, %v2011_v60  ;;  %v2241_v19 = vmul.f32 %v2676_v26, %v2209_v44 }
 0x442   : > { %v2300_v47 = vadd.f32 %v2299_v42, %v2298_v13 }
 0x443   : > { %v2240_v24 = vmul.f32 %v2675_v56, %v2208_v31  ;;  %v2303_v45 = vsel %vm2243_vm3, %v2241_v19, 0.0 }
 0x445   : > { %v2301_v51 = vsel %vm2243_vm3, %v2240_v24, 0.0 }
 0x446   : > { %v2302_v6 = vadd.f32 %v2301_v51, %v2300_v47 }
 0x448   : > { %v2304_v28 = vadd.f32 %v2303_v45, %v2302_v6 }
 0x44a   : > { %v2306_v40 = vadd.f32 %v2305_v48, %v2304_v28 }
 0x44c   : > { %2307 = vadd.xlane.f32.xlu2 %v2306_v40 }
 0x4bf   : > { %v2308_v53 = vpop.xlane.xlu2 %2307 }
 0x4c0   : > { %v2309_v63 = vrot.slane %v2308_v53, 4 }
 0x4c2   : > { %v2310_v46 = vadd.f32 %v2309_v63, %v2308_v53 }
 0x4c4   : > { %v2311_v35 = vrot.slane %v2310_v46, 2 }
 0x4c6   : > { %v2312_v30 = vadd.f32 %v2311_v35, %v2310_v46 }
 0x4c8   : > { %v2313_v58 = vrot.slane %v2312_v30, 1 }
 0x4ca   : > { %v2314_v9 = vadd.f32 %v2313_v58, %v2312_v30 }
 0x4cc   : > { %2722 = vpush %v2314_v9 }
 0x4fd   : > { %s2723_s13 = spop %2722 }
 0x4fe   : > { %v2316_v55 = vstv %s2723_s13 }
 0x4ff   : > { %2317 = vst [vmem:[%s422_s27] sm:$0xff] %v2316_v55 }
 0x500 PF: > { %s22_s17 = sadd.s32 1, %s2875_s17  }
 0x501   : > { %p19_p5 = scmp.ge.s32.totalorder %s22_s17, 4  }
 0x503   :  { %21 = sbr.rel (!%p19_p5) target bundleno = 1 (0x1), region = 105 }

</bundles_post_ra>
